<compile_context>
chip_gen: v7x
topology: tpu7x:2x2x1
jax: 0.10.0
libtpu: 0.0.40
codegen_flags: <defaults>
</compile_context>

<pallas_src>
import functools

import jax
import jax.numpy as jnp
import numpy as np
from jax.experimental import pallas as pl
from jax.experimental.pallas import tpu as pltpu

LN_EPS = 1e-5
MASK_VALUE = -1e30  # finite additive mask (no -inf / NaN risk if T is padded)


def _layernorm(x, gamma, beta):
    # f32 elementwise math (biased variance, like torch.nn.LayerNorm)
    mu = jnp.mean(x, axis=-1, keepdims=True)
    var = jnp.mean((x - mu) ** 2, axis=-1, keepdims=True)
    return (x - mu) * jax.lax.rsqrt(var + LN_EPS) * gamma + beta


def block_kernel(n_head,
                 x_ref,
                 ln1_g_ref, ln1_b_ref,
                 wqkv_ref, wproj_ref, bproj_ref,
                 ln2_g_ref, ln2_b_ref,
                 w1_ref, b1_ref, w2_ref, b2_ref,
                 out_ref):
    bt, T, C = x_ref.shape
    hs = C // n_head
    R = bt * T                                # rows processed this grid step

    x = x_ref[...].reshape(R, C)              # leading-dim reshape: free

    # ---------------- LayerNorm 1 (f32) ----------------
    h = _layernorm(x, ln1_g_ref[...], ln1_b_ref[...])

    # ---------------- fused QKV projection ----------------
    # one (R, C) @ (C, 3C) bf16 matmul, f32 accumulate; Q weights pre-scaled
    qkv = jnp.dot(h.astype(jnp.bfloat16), wqkv_ref[...],
                  preferred_element_type=jnp.float32)          # (R, 3C) f32
    # q/k/v only ever feed matmuls -> cast once, before slicing / relayouts
    qkv = qkv.astype(jnp.bfloat16)
    q = qkv[:, 0 * C:1 * C]
    k = qkv[:, 1 * C:2 * C]
    v = qkv[:, 2 * C:3 * C]

    def to_heads(t):                          # (R, C) -> (bt*n_head, T, hs), bf16
        t = t.reshape(bt, T, n_head, hs)
        t = jnp.transpose(t, (0, 2, 1, 3))    # lane dim (hs) untouched
        return t.reshape(bt * n_head, T, hs)

    qh, kh, vh = to_heads(q), to_heads(k), to_heads(v)

    # ---------------- batched multi-head attention ----------------
    # scores: contract the last (hs) dims directly — no explicit K transpose
    s = jax.lax.dot_general(qh, kh, (((2,), (2,)), ((0,), (0,))),
                            preferred_element_type=jnp.float32)  # (BH, T, T) f32

    # causal mask built in-kernel (iota + select); no resident (T,T) buffer
    row = jax.lax.broadcasted_iota(jnp.int32, (T, T), 0)
    col = jax.lax.broadcasted_iota(jnp.int32, (T, T), 1)
    mask = jnp.where(row >= col, 0.0, MASK_VALUE).astype(jnp.float32)
    s = s + mask                               # broadcast over the BH dim

    # hand-rolled softmax in f32; the 1/l normalization is applied AFTER the
    # PV matmul so it scales T*hs elements per row-block, not T*T.
    m = jnp.max(s, axis=-1, keepdims=True)
    p = jnp.exp(s - m)
    l = jnp.sum(p, axis=-1, keepdims=True)
    # attention dropout: p = 0.0 -> identity

    att = jax.lax.dot_general(p.astype(jnp.bfloat16), vh,
                              (((2,), (1,)), ((0,), (0,))),
                              preferred_element_type=jnp.float32)  # (BH, T, hs)
    att = att * pl.reciprocal(l, approx=True)  # f32 scale, EUP slot
    att = att.astype(jnp.bfloat16)

    # merge heads back: (BH, T, hs) -> (R, C)  (== concat along feature dim)
    # TODO(synk): eliminate this relayout by contracting (head, hs) jointly
    # against a host-reshaped (n_head, hs, C) wproj via dot_general with
    # contracting dims ((1,3),(0,1)) once that lowering is verified on Mosaic.
    sa = att.reshape(bt, n_head, T, hs)
    sa = jnp.transpose(sa, (0, 2, 1, 3)).reshape(R, C)

    sa = jnp.dot(sa, wproj_ref[...],
                 preferred_element_type=jnp.float32) + bproj_ref[...]
    # proj dropout: p = 0.0 -> identity

    x1 = x + sa                               # residual 1 (f32)

    # ---------------- LayerNorm 2 + FeedForward ----------------
    h2 = _layernorm(x1, ln2_g_ref[...], ln2_b_ref[...])
    f = jnp.dot(h2.astype(jnp.bfloat16), w1_ref[...],
                preferred_element_type=jnp.float32) + b1_ref[...]
    f = jnp.maximum(f, 0.0)                   # ReLU in f32
    f = jnp.dot(f.astype(jnp.bfloat16), w2_ref[...],
                preferred_element_type=jnp.float32) + b2_ref[...]
    # ffwd dropout: p = 0.0 -> identity

    out_ref[...] = (x1 + f).reshape(bt, T, C)


def _vmem_limit_bytes(bt, T, C, n_head):
    """Rough per-step VMEM estimate (activations + weights), clamped to HW."""
    R, BH = bt * T, bt * n_head
    est = 88 * R * C + 48 * C * C + 10 * BH * T * T + (2 << 20)
    est = int(1.5 * est)                       # safety margin
    try:
        cap = int(0.75 * pltpu.get_tpu_info().vmem_capacity_bytes)
    except Exception:
        cap = 48 * 1024 * 1024                 # safe on v7x's 64 MiB physical
    return min(max(est, 16 * 1024 * 1024), cap)


def transformer_block(x, params, n_head, *, block_batch=1):
    """Fused transformer Block forward. `params` holds f32 PyTorch-layout
    weights (already transposed to (in, out)); preprocessing (QKV fusion,
    scale folding, bf16 casting) happens here on the host.

    block_batch: batch elements processed per grid step.  Keep B//block_batch
    >= 2 on v7x (2 TensorCores); on v5e/v6e use the largest value that fits
    VMEM to amortize the ~0.35 us per-grid-step overhead.
    """
    B, T, C = x.shape
    assert C % n_head == 0
    bt = block_batch
    assert B % bt == 0, "block_batch must divide the batch"

    scale = C ** (-0.5)  # matches PyTorch Head: scales by n_embd**-0.5, NOT head_size

    # Fuse QKV, fold the attention scale into the Q weights, cast matmul
    # weights to bf16. LN params and biases stay f32 (added in f32).
    wqkv = jnp.concatenate(
        [params["wq"] * scale, params["wk"], params["wv"]], axis=1
    ).astype(jnp.bfloat16)                                     # (C, 3C)
    wproj = params["wproj"].astype(jnp.bfloat16)               # (C, C)
    w1 = params["w1"].astype(jnp.bfloat16)                     # (C, 4C)
    w2 = params["w2"].astype(jnp.bfloat16)                     # (4C, C)

    param_list = [
        params["ln1_g"], params["ln1_b"],
        wqkv, wproj, params["bproj"],
        params["ln2_g"], params["ln2_b"],
        w1, params["b1"], w2, params["b2"],
    ]

    def build(buffer_resident_once):
        def resident(p):
            nd = p.ndim
            kwargs = {}
            if buffer_resident_once:
                # grid-invariant operands: single VMEM buffer instead of the
                # default double buffer (halves resident weight footprint).
                kwargs["pipeline_mode"] = pl.Buffered(1)
            return pl.BlockSpec(p.shape, lambda b, _nd=nd: (0,) * _nd, **kwargs)

        in_specs = [pl.BlockSpec((bt, T, C), lambda b: (b, 0, 0))] + \
                   [resident(p) for p in param_list]

        return pl.pallas_call(
            functools.partial(block_kernel, n_head),
            out_shape=jax.ShapeDtypeStruct((B, T, C), jnp.float32),
            grid_spec=pltpu.PrefetchScalarGridSpec(
                num_scalar_prefetch=0,
                grid=(B // bt,),
                in_specs=in_specs,
                out_specs=pl.BlockSpec((bt, T, C), lambda b: (b, 0, 0)),
            ),
            compiler_params=pltpu.CompilerParams(
                dimension_semantics=("parallel",),
                vmem_limit_bytes=_vmem_limit_bytes(bt, T, C, n_head),
            ),
        )

    try:
        return build(True)(x, *param_list)
    except Exception:
        # pipeline_mode=pl.Buffered(1) not supported on this jax version:
        # fall back to default double-buffering of the invariant weights.
        return build(False)(x, *param_list)


# ---------------- pure-JAX f32 reference (PyTorch semantics) ----------------
def reference_block(x, params, n_head):
    B, T, C = x.shape
    hs = C // n_head

    def ln(z, g, b):
        mu = jnp.mean(z, -1, keepdims=True)
        var = jnp.mean((z - mu) ** 2, -1, keepdims=True)
        return (z - mu) / jnp.sqrt(var + LN_EPS) * g + b

    h = ln(x, params["ln1_g"][0], params["ln1_b"][0])
    q = h @ params["wq"]
    k = h @ params["wk"]
    v = h @ params["wv"]
    causal = jnp.tril(jnp.ones((T, T), bool))
    outs = []
    for hh in range(n_head):
        qh, kh, vh = (a[..., hh * hs:(hh + 1) * hs] for a in (q, k, v))
        wei = qh @ jnp.swapaxes(kh, -1, -2) * C ** (-0.5)
        wei = jnp.where(causal, wei, -jnp.inf)
        wei = jax.nn.softmax(wei, -1)
        outs.append(wei @ vh)
    sa = jnp.concatenate(outs, -1) @ params["wproj"] + params["bproj"][0]
    x1 = x + sa
    h2 = ln(x1, params["ln2_g"][0], params["ln2_b"][0])
    ff = jnp.maximum(h2 @ params["w1"] + params["b1"][0], 0.0)
    ff = ff @ params["w2"] + params["b2"][0]
    return x1 + ff


if __name__ == "__main__":
    B, T, C, n_head = 2, 8, 32, 4          # batch, block_size, n_embd, heads
    key = jax.random.PRNGKey(0)
    keys = jax.random.split(key, 12)

    def w(k, shape, scale=0.05):
        return (scale * jax.random.normal(k, shape)).astype(jnp.float32)

    params = {
        "ln1_g": jnp.ones((1, C), jnp.float32),
        "ln1_b": jnp.zeros((1, C), jnp.float32),
        "wq": w(keys[0], (C, C)),
        "wk": w(keys[1], (C, C)),
        "wv": w(keys[2], (C, C)),
        "wproj": w(keys[3], (C, C)),
        "bproj": w(keys[4], (1, C)),
        "ln2_g": jnp.ones((1, C), jnp.float32),
        "ln2_b": jnp.zeros((1, C), jnp.float32),
        "w1": w(keys[5], (C, 4 * C)),
        "b1": w(keys[6], (1, 4 * C)),
        "w2": w(keys[7], (4 * C, C)),
        "b2": w(keys[8], (1, C)),
    }

    x = jax.random.normal(keys[9], (B, T, C), jnp.float32)

    # block_batch=1 -> grid length 2: both v7x TensorCores get work.
    out = transformer_block(x, params, n_head, block_batch=1)
    out = jax.block_until_ready(out)

    ref = reference_block(x, params, n_head)
    # bf16 matmul operands (f32 accumulation) + approx reciprocal in softmax
    # -> compare with bf16-appropriate tolerance against the f32 reference.
    np.testing.assert_allclose(np.asarray(out), np.asarray(ref),
                               rtol=2e-2, atol=2e-2)
    print("KERNEL_OK")
</pallas_src>

<mosaic_0001>
module attributes {stable_mosaic.version = 11 : i64} {
  func.func @block_kernel(%arg0: i32, %arg1: memref<1x8x32xf32, #tpu.memory_space<vmem>>, %arg2: memref<1x32xf32, #tpu.memory_space<vmem>>, %arg3: memref<1x32xf32, #tpu.memory_space<vmem>>, %arg4: memref<32x96xbf16, #tpu.memory_space<vmem>>, %arg5: memref<32x32xbf16, #tpu.memory_space<vmem>>, %arg6: memref<1x32xf32, #tpu.memory_space<vmem>>, %arg7: memref<1x32xf32, #tpu.memory_space<vmem>>, %arg8: memref<1x32xf32, #tpu.memory_space<vmem>>, %arg9: memref<32x128xbf16, #tpu.memory_space<vmem>>, %arg10: memref<1x128xf32, #tpu.memory_space<vmem>>, %arg11: memref<128x32xbf16, #tpu.memory_space<vmem>>, %arg12: memref<1x32xf32, #tpu.memory_space<vmem>>, %arg13: memref<1x8x32xf32, #tpu.memory_space<vmem>>) attributes {dimension_semantics = [#tpu.dimension_semantics<parallel>], iteration_bounds = array<i64: 2>, scalar_prefetch = 0 : i64, scratch_operands = 0 : i64, tpu.core_type = #tpu.core_type<tc>, window_params = [{transform_indices = @transform_0, window_bounds = array<i64: 1, 8, 32>}, {pipeline_mode = #tpu.pipeline_mode<synchronous>, transform_indices = @transform_1, window_bounds = array<i64: 1, 32>}, {pipeline_mode = #tpu.pipeline_mode<synchronous>, transform_indices = @transform_2, window_bounds = array<i64: 1, 32>}, {pipeline_mode = #tpu.pipeline_mode<synchronous>, transform_indices = @transform_3, window_bounds = array<i64: 32, 96>}, {pipeline_mode = #tpu.pipeline_mode<synchronous>, transform_indices = @transform_4, window_bounds = array<i64: 32, 32>}, {pipeline_mode = #tpu.pipeline_mode<synchronous>, transform_indices = @transform_5, window_bounds = array<i64: 1, 32>}, {pipeline_mode = #tpu.pipeline_mode<synchronous>, transform_indices = @transform_6, window_bounds = array<i64: 1, 32>}, {pipeline_mode = #tpu.pipeline_mode<synchronous>, transform_indices = @transform_7, window_bounds = array<i64: 1, 32>}, {pipeline_mode = #tpu.pipeline_mode<synchronous>, transform_indices = @transform_8, window_bounds = array<i64: 32, 128>}, {pipeline_mode = #tpu.pipeline_mode<synchronous>, transform_indices = @transform_9, window_bounds = array<i64: 1, 128>}, {pipeline_mode = #tpu.pipeline_mode<synchronous>, transform_indices = @transform_10, window_bounds = array<i64: 128, 32>}, {pipeline_mode = #tpu.pipeline_mode<synchronous>, transform_indices = @transform_11, window_bounds = array<i64: 1, 32>}, {transform_indices = @transform_12, window_bounds = array<i64: 1, 8, 32>}]} {
    %c0 = arith.constant 0 : index
    %c0_0 = arith.constant 0 : index
    %c0_1 = arith.constant 0 : index
    %0 = vector.load %arg1[%c0, %c0_0, %c0_1] : memref<1x8x32xf32, #tpu.memory_space<vmem>>, vector<1x8x32xf32>
    %1 = vector.shape_cast %0 : vector<1x8x32xf32> to vector<8x32xf32>
    %c0_2 = arith.constant 0 : index
    %c0_3 = arith.constant 0 : index
    %2 = vector.load %arg2[%c0_2, %c0_3] : memref<1x32xf32, #tpu.memory_space<vmem>>, vector<1x32xf32>
    %c0_4 = arith.constant 0 : index
    %c0_5 = arith.constant 0 : index
    %3 = vector.load %arg3[%c0_4, %c0_5] : memref<1x32xf32, #tpu.memory_space<vmem>>, vector<1x32xf32>
    %cst = arith.constant dense<0.000000e+00> : vector<8xf32>
    %4 = vector.multi_reduction <add>, %1, %cst [1] : vector<8x32xf32> to vector<8xf32>
    %5 = vector.shape_cast %4 : vector<8xf32> to vector<8x1xf32>
    %cst_6 = arith.constant 3.200000e+01 : f32
    %6 = vector.broadcast %cst_6 : f32 to vector<8x1xf32>
    %7 = arith.divf %5, %6 : vector<8x1xf32>
    %8 = vector.broadcast %7 : vector<8x1xf32> to vector<8x32xf32>
    %9 = arith.subf %1, %8 : vector<8x32xf32>
    %10 = arith.mulf %9, %9 : vector<8x32xf32>
    %cst_7 = arith.constant dense<0.000000e+00> : vector<8xf32>
    %11 = vector.multi_reduction <add>, %10, %cst_7 [1] : vector<8x32xf32> to vector<8xf32>
    %12 = vector.shape_cast %11 : vector<8xf32> to vector<8x1xf32>
    %cst_8 = arith.constant 3.200000e+01 : f32
    %13 = vector.broadcast %cst_8 : f32 to vector<8x1xf32>
    %14 = arith.divf %12, %13 : vector<8x1xf32>
    %15 = vector.broadcast %7 : vector<8x1xf32> to vector<8x32xf32>
    %16 = arith.subf %1, %15 : vector<8x32xf32>
    %cst_9 = arith.constant 9.99999974E-6 : f32
    %17 = vector.broadcast %cst_9 : f32 to vector<8x1xf32>
    %18 = arith.addf %14, %17 : vector<8x1xf32>
    %19 = math.rsqrt %18 : vector<8x1xf32>
    %20 = vector.broadcast %19 : vector<8x1xf32> to vector<8x32xf32>
    %21 = arith.mulf %16, %20 : vector<8x32xf32>
    %22 = vector.broadcast %2 : vector<1x32xf32> to vector<8x32xf32>
    %23 = arith.mulf %21, %22 : vector<8x32xf32>
    %24 = vector.broadcast %3 : vector<1x32xf32> to vector<8x32xf32>
    %25 = arith.addf %23, %24 : vector<8x32xf32>
    %26 = arith.truncf %25 : vector<8x32xf32> to vector<8x32xbf16>
    %c0_10 = arith.constant 0 : index
    %c0_11 = arith.constant 0 : index
    %27 = vector.load %arg4[%c0_10, %c0_11] : memref<32x96xbf16, #tpu.memory_space<vmem>>, vector<32x96xbf16>
    %cst_12 = arith.constant dense<0.000000e+00> : vector<8x96xf32>
    %28 = tpu.matmul %26, %27, %cst_12 {dimension_numbers = #tpu.dot_dimension_numbers<[1], [0], [0], [1], [0, 0, 1, 1], [], []>} : vector<8x32xbf16>, vector<32x96xbf16>, vector<8x96xf32> -> vector<8x96xf32>
    %29 = arith.truncf %28 : vector<8x96xf32> to vector<8x96xbf16>
    %30 = vector.extract_strided_slice %29 {offsets = [0, 0], sizes = [8, 32], strides = [1, 1]} : vector<8x96xbf16> to vector<8x32xbf16>
    %31 = vector.extract_strided_slice %29 {offsets = [0, 32], sizes = [8, 32], strides = [1, 1]} : vector<8x96xbf16> to vector<8x32xbf16>
    %32 = vector.extract_strided_slice %29 {offsets = [0, 64], sizes = [8, 32], strides = [1, 1]} : vector<8x96xbf16> to vector<8x32xbf16>
    %33 = vector.shape_cast %30 : vector<8x32xbf16> to vector<1x8x4x8xbf16>
    %34 = tpu.transpose %33, [0, 2, 1, 3] : vector<1x8x4x8xbf16> -> vector<1x4x8x8xbf16>
    %35 = vector.shape_cast %34 : vector<1x4x8x8xbf16> to vector<4x8x8xbf16>
    %36 = vector.shape_cast %31 : vector<8x32xbf16> to vector<1x8x4x8xbf16>
    %37 = tpu.transpose %36, [0, 2, 1, 3] : vector<1x8x4x8xbf16> -> vector<1x4x8x8xbf16>
    %38 = vector.shape_cast %37 : vector<1x4x8x8xbf16> to vector<4x8x8xbf16>
    %39 = vector.shape_cast %32 : vector<8x32xbf16> to vector<1x8x4x8xbf16>
    %40 = tpu.transpose %39, [0, 2, 1, 3] : vector<1x8x4x8xbf16> -> vector<1x4x8x8xbf16>
    %41 = vector.shape_cast %40 : vector<1x4x8x8xbf16> to vector<4x8x8xbf16>
    %cst_13 = arith.constant dense<0.000000e+00> : vector<4x8x8xf32>
    %42 = tpu.matmul %35, %38, %cst_13 {dimension_numbers = #tpu.dot_dimension_numbers<[2], [2], [1], [1], [0, 0, 0, 1, 1, 1], [0], [0]>} : vector<4x8x8xbf16>, vector<4x8x8xbf16>, vector<4x8x8xf32> -> vector<4x8x8xf32>
    %43 = tpu.iota {dimensions = array<i32: 0>} : vector<8x8xi32>
    %44 = tpu.iota {dimensions = array<i32: 1>} : vector<8x8xi32>
    %45 = arith.cmpi sge, %43, %44 : vector<8x8xi32>
    %cst_14 = arith.constant 0.000000e+00 : f32
    %cst_15 = arith.constant -1.000000e+30 : f32
    %46 = vector.broadcast %cst_14 : f32 to vector<8x8xf32>
    %47 = vector.broadcast %cst_15 : f32 to vector<8x8xf32>
    %48 = arith.select %45, %46, %47 : vector<8x8xi1>, vector<8x8xf32>
    %49 = vector.shape_cast %48 : vector<8x8xf32> to vector<1x8x8xf32>
    %50 = vector.broadcast %49 : vector<1x8x8xf32> to vector<4x8x8xf32>
    %51 = arith.addf %42, %50 : vector<4x8x8xf32>
    %cst_16 = arith.constant dense<0xFF800000> : vector<4x8xf32>
    %52 = vector.multi_reduction <maximumf>, %51, %cst_16 [2] : vector<4x8x8xf32> to vector<4x8xf32>
    %53 = vector.shape_cast %52 : vector<4x8xf32> to vector<4x8x1xf32>
    %54 = vector.broadcast %53 : vector<4x8x1xf32> to vector<4x8x8xf32>
    %55 = arith.subf %51, %54 : vector<4x8x8xf32>
    %56 = math.exp %55 : vector<4x8x8xf32>
    %cst_17 = arith.constant dense<0.000000e+00> : vector<4x8xf32>
    %57 = vector.multi_reduction <add>, %56, %cst_17 [2] : vector<4x8x8xf32> to vector<4x8xf32>
    %58 = vector.shape_cast %57 : vector<4x8xf32> to vector<4x8x1xf32>
    %59 = arith.truncf %56 : vector<4x8x8xf32> to vector<4x8x8xbf16>
    %cst_18 = arith.constant dense<0.000000e+00> : vector<4x8x8xf32>
    %60 = tpu.matmul %59, %41, %cst_18 {dimension_numbers = #tpu.dot_dimension_numbers<[2], [1], [1], [2], [0, 0, 0, 1, 1, 2], [0], [0]>} : vector<4x8x8xbf16>, vector<4x8x8xbf16>, vector<4x8x8xf32> -> vector<4x8x8xf32>
    %61 = tpu.reciprocal %58 {approx = true} : vector<4x8x1xf32> -> vector<4x8x1xf32>
    %62 = vector.broadcast %61 : vector<4x8x1xf32> to vector<4x8x8xf32>
    %63 = arith.mulf %60, %62 : vector<4x8x8xf32>
    %64 = arith.truncf %63 : vector<4x8x8xf32> to vector<4x8x8xbf16>
    %65 = vector.shape_cast %64 : vector<4x8x8xbf16> to vector<1x4x8x8xbf16>
    %66 = tpu.transpose %65, [0, 2, 1, 3] : vector<1x4x8x8xbf16> -> vector<1x8x4x8xbf16>
    %67 = vector.shape_cast %66 : vector<1x8x4x8xbf16> to vector<8x32xbf16>
    %c0_19 = arith.constant 0 : index
    %c0_20 = arith.constant 0 : index
    %68 = vector.load %arg5[%c0_19, %c0_20] : memref<32x32xbf16, #tpu.memory_space<vmem>>, vector<32x32xbf16>
    %cst_21 = arith.constant dense<0.000000e+00> : vector<8x32xf32>
    %69 = tpu.matmul %67, %68, %cst_21 {dimension_numbers = #tpu.dot_dimension_numbers<[1], [0], [0], [1], [0, 0, 1, 1], [], []>} : vector<8x32xbf16>, vector<32x32xbf16>, vector<8x32xf32> -> vector<8x32xf32>
    %c0_22 = arith.constant 0 : index
    %c0_23 = arith.constant 0 : index
    %70 = vector.load %arg6[%c0_22, %c0_23] : memref<1x32xf32, #tpu.memory_space<vmem>>, vector<1x32xf32>
    %71 = vector.broadcast %70 : vector<1x32xf32> to vector<8x32xf32>
    %72 = arith.addf %69, %71 : vector<8x32xf32>
    %73 = arith.addf %1, %72 : vector<8x32xf32>
    %c0_24 = arith.constant 0 : index
    %c0_25 = arith.constant 0 : index
    %74 = vector.load %arg7[%c0_24, %c0_25] : memref<1x32xf32, #tpu.memory_space<vmem>>, vector<1x32xf32>
    %c0_26 = arith.constant 0 : index
    %c0_27 = arith.constant 0 : index
    %75 = vector.load %arg8[%c0_26, %c0_27] : memref<1x32xf32, #tpu.memory_space<vmem>>, vector<1x32xf32>
    %cst_28 = arith.constant dense<0.000000e+00> : vector<8xf32>
    %76 = vector.multi_reduction <add>, %73, %cst_28 [1] : vector<8x32xf32> to vector<8xf32>
    %77 = vector.shape_cast %76 : vector<8xf32> to vector<8x1xf32>
    %cst_29 = arith.constant 3.200000e+01 : f32
    %78 = vector.broadcast %cst_29 : f32 to vector<8x1xf32>
    %79 = arith.divf %77, %78 : vector<8x1xf32>
    %80 = vector.broadcast %79 : vector<8x1xf32> to vector<8x32xf32>
    %81 = arith.subf %73, %80 : vector<8x32xf32>
    %82 = arith.mulf %81, %81 : vector<8x32xf32>
    %cst_30 = arith.constant dense<0.000000e+00> : vector<8xf32>
    %83 = vector.multi_reduction <add>, %82, %cst_30 [1] : vector<8x32xf32> to vector<8xf32>
    %84 = vector.shape_cast %83 : vector<8xf32> to vector<8x1xf32>
    %cst_31 = arith.constant 3.200000e+01 : f32
    %85 = vector.broadcast %cst_31 : f32 to vector<8x1xf32>
    %86 = arith.divf %84, %85 : vector<8x1xf32>
    %87 = vector.broadcast %79 : vector<8x1xf32> to vector<8x32xf32>
    %88 = arith.subf %73, %87 : vector<8x32xf32>
    %cst_32 = arith.constant 9.99999974E-6 : f32
    %89 = vector.broadcast %cst_32 : f32 to vector<8x1xf32>
    %90 = arith.addf %86, %89 : vector<8x1xf32>
    %91 = math.rsqrt %90 : vector<8x1xf32>
    %92 = vector.broadcast %91 : vector<8x1xf32> to vector<8x32xf32>
    %93 = arith.mulf %88, %92 : vector<8x32xf32>
    %94 = vector.broadcast %74 : vector<1x32xf32> to vector<8x32xf32>
    %95 = arith.mulf %93, %94 : vector<8x32xf32>
    %96 = vector.broadcast %75 : vector<1x32xf32> to vector<8x32xf32>
    %97 = arith.addf %95, %96 : vector<8x32xf32>
    %98 = arith.truncf %97 : vector<8x32xf32> to vector<8x32xbf16>
    %c0_33 = arith.constant 0 : index
    %c0_34 = arith.constant 0 : index
    %99 = vector.load %arg9[%c0_33, %c0_34] : memref<32x128xbf16, #tpu.memory_space<vmem>>, vector<32x128xbf16>
    %cst_35 = arith.constant dense<0.000000e+00> : vector<8x128xf32>
    %100 = tpu.matmul %98, %99, %cst_35 {dimension_numbers = #tpu.dot_dimension_numbers<[1], [0], [0], [1], [0, 0, 1, 1], [], []>} : vector<8x32xbf16>, vector<32x128xbf16>, vector<8x128xf32> -> vector<8x128xf32>
    %c0_36 = arith.constant 0 : index
    %c0_37 = arith.constant 0 : index
    %101 = vector.load %arg10[%c0_36, %c0_37] : memref<1x128xf32, #tpu.memory_space<vmem>>, vector<1x128xf32>
    %102 = vector.broadcast %101 : vector<1x128xf32> to vector<8x128xf32>
    %103 = arith.addf %100, %102 : vector<8x128xf32>
    %cst_38 = arith.constant 0.000000e+00 : f32
    %104 = vector.broadcast %cst_38 : f32 to vector<8x128xf32>
    %105 = arith.maximumf %103, %104 : vector<8x128xf32>
    %106 = arith.truncf %105 : vector<8x128xf32> to vector<8x128xbf16>
    %c0_39 = arith.constant 0 : index
    %c0_40 = arith.constant 0 : index
    %107 = vector.load %arg11[%c0_39, %c0_40] : memref<128x32xbf16, #tpu.memory_space<vmem>>, vector<128x32xbf16>
    %cst_41 = arith.constant dense<0.000000e+00> : vector<8x32xf32>
    %108 = tpu.matmul %106, %107, %cst_41 {dimension_numbers = #tpu.dot_dimension_numbers<[1], [0], [0], [1], [0, 0, 1, 1], [], []>} : vector<8x128xbf16>, vector<128x32xbf16>, vector<8x32xf32> -> vector<8x32xf32>
    %c0_42 = arith.constant 0 : index
    %c0_43 = arith.constant 0 : index
    %109 = vector.load %arg12[%c0_42, %c0_43] : memref<1x32xf32, #tpu.memory_space<vmem>>, vector<1x32xf32>
    %110 = vector.broadcast %109 : vector<1x32xf32> to vector<8x32xf32>
    %111 = arith.addf %108, %110 : vector<8x32xf32>
    %112 = arith.addf %73, %111 : vector<8x32xf32>
    %113 = vector.shape_cast %112 : vector<8x32xf32> to vector<1x8x32xf32>
    %c0_44 = arith.constant 0 : index
    %c0_45 = arith.constant 0 : index
    %c0_46 = arith.constant 0 : index
    %114 = vector.load %arg13[%c0_44, %c0_45, %c0_46] : memref<1x8x32xf32, #tpu.memory_space<vmem>>, vector<1x8x32xf32>
    tpu.vector_store %arg13[%c0_44, %c0_45, %c0_46], %113 {strides = array<i32>} : memref<1x8x32xf32, #tpu.memory_space<vmem>>, vector<1x8x32xf32>,
    return
  }
  func.func @transform_0(%arg0: i32) -> (i32, i32, i32) {
    %c0_i32 = arith.constant 0 : i32
    %c0_i32_0 = arith.constant 0 : i32
    %c0_i32_1 = arith.constant 0 : i32
    return %arg0, %c0_i32, %c0_i32_0 : i32, i32, i32
  }
  func.func @transform_1(%arg0: i32) -> (i32, i32) {
    %c0_i32 = arith.constant 0 : i32
    %c0_i32_0 = arith.constant 0 : i32
    %c0_i32_1 = arith.constant 0 : i32
    return %c0_i32, %c0_i32_0 : i32, i32
  }
  func.func @transform_2(%arg0: i32) -> (i32, i32) {
    %c0_i32 = arith.constant 0 : i32
    %c0_i32_0 = arith.constant 0 : i32
    %c0_i32_1 = arith.constant 0 : i32
    return %c0_i32, %c0_i32_0 : i32, i32
  }
  func.func @transform_3(%arg0: i32) -> (i32, i32) {
    %c0_i32 = arith.constant 0 : i32
    %c0_i32_0 = arith.constant 0 : i32
    %c0_i32_1 = arith.constant 0 : i32
    return %c0_i32, %c0_i32_0 : i32, i32
  }
  func.func @transform_4(%arg0: i32) -> (i32, i32) {
    %c0_i32 = arith.constant 0 : i32
    %c0_i32_0 = arith.constant 0 : i32
    %c0_i32_1 = arith.constant 0 : i32
    return %c0_i32, %c0_i32_0 : i32, i32
  }
  func.func @transform_5(%arg0: i32) -> (i32, i32) {
    %c0_i32 = arith.constant 0 : i32
    %c0_i32_0 = arith.constant 0 : i32
    %c0_i32_1 = arith.constant 0 : i32
    return %c0_i32, %c0_i32_0 : i32, i32
  }
  func.func @transform_6(%arg0: i32) -> (i32, i32) {
    %c0_i32 = arith.constant 0 : i32
    %c0_i32_0 = arith.constant 0 : i32
    %c0_i32_1 = arith.constant 0 : i32
    return %c0_i32, %c0_i32_0 : i32, i32
  }
  func.func @transform_7(%arg0: i32) -> (i32, i32) {
    %c0_i32 = arith.constant 0 : i32
    %c0_i32_0 = arith.constant 0 : i32
    %c0_i32_1 = arith.constant 0 : i32
    return %c0_i32, %c0_i32_0 : i32, i32
  }
  func.func @transform_8(%arg0: i32) -> (i32, i32) {
    %c0_i32 = arith.constant 0 : i32
    %c0_i32_0 = arith.constant 0 : i32
    %c0_i32_1 = arith.constant 0 : i32
    return %c0_i32, %c0_i32_0 : i32, i32
  }
  func.func @transform_9(%arg0: i32) -> (i32, i32) {
    %c0_i32 = arith.constant 0 : i32
    %c0_i32_0 = arith.constant 0 : i32
    %c0_i32_1 = arith.constant 0 : i32
    return %c0_i32, %c0_i32_0 : i32, i32
  }
  func.func @transform_10(%arg0: i32) -> (i32, i32) {
    %c0_i32 = arith.constant 0 : i32
    %c0_i32_0 = arith.constant 0 : i32
    %c0_i32_1 = arith.constant 0 : i32
    return %c0_i32, %c0_i32_0 : i32, i32
  }
  func.func @transform_11(%arg0: i32) -> (i32, i32) {
    %c0_i32 = arith.constant 0 : i32
    %c0_i32_0 = arith.constant 0 : i32
    %c0_i32_1 = arith.constant 0 : i32
    return %c0_i32, %c0_i32_0 : i32, i32
  }
  func.func @transform_12(%arg0: i32) -> (i32, i32, i32) {
    %c0_i32 = arith.constant 0 : i32
    %c0_i32_0 = arith.constant 0 : i32
    %c0_i32_1 = arith.constant 0 : i32
    return %arg0, %c0_i32, %c0_i32_0 : i32, i32, i32
  }
}

module attributes {stable_mosaic.version = 11 : i64} {
  func.func @block_kernel(%arg0: i32, %arg1: memref<1x8x32xf32, #tpu.memory_space<vmem>>, %arg2: memref<1x32xf32, #tpu.memory_space<vmem>>, %arg3: memref<1x32xf32, #tpu.memory_space<vmem>>, %arg4: memref<32x96xbf16, #tpu.memory_space<vmem>>, %arg5: memref<32x32xbf16, #tpu.memory_space<vmem>>, %arg6: memref<1x32xf32, #tpu.memory_space<vmem>>, %arg7: memref<1x32xf32, #tpu.memory_space<vmem>>, %arg8: memref<1x32xf32, #tpu.memory_space<vmem>>, %arg9: memref<32x128xbf16, #tpu.memory_space<vmem>>, %arg10: memref<1x128xf32, #tpu.memory_space<vmem>>, %arg11: memref<128x32xbf16, #tpu.memory_space<vmem>>, %arg12: memref<1x32xf32, #tpu.memory_space<vmem>>, %arg13: memref<1x8x32xf32, #tpu.memory_space<vmem>>) attributes {dimension_semantics = [#tpu.dimension_semantics<parallel>], iteration_bounds = array<i64: 2>, scalar_prefetch = 0 : i64, scratch_operands = 0 : i64, tpu.core_type = #tpu.core_type<tc>, window_params = [{transform_indices = @transform_0, window_bounds = array<i64: 1, 8, 32>}, {pipeline_mode = #tpu.pipeline_mode<synchronous>, transform_indices = @transform_1, window_bounds = array<i64: 1, 32>}, {pipeline_mode = #tpu.pipeline_mode<synchronous>, transform_indices = @transform_2, window_bounds = array<i64: 1, 32>}, {pipeline_mode = #tpu.pipeline_mode<synchronous>, transform_indices = @transform_3, window_bounds = array<i64: 32, 96>}, {pipeline_mode = #tpu.pipeline_mode<synchronous>, transform_indices = @transform_4, window_bounds = array<i64: 32, 32>}, {pipeline_mode = #tpu.pipeline_mode<synchronous>, transform_indices = @transform_5, window_bounds = array<i64: 1, 32>}, {pipeline_mode = #tpu.pipeline_mode<synchronous>, transform_indices = @transform_6, window_bounds = array<i64: 1, 32>}, {pipeline_mode = #tpu.pipeline_mode<synchronous>, transform_indices = @transform_7, window_bounds = array<i64: 1, 32>}, {pipeline_mode = #tpu.pipeline_mode<synchronous>, transform_indices = @transform_8, window_bounds = array<i64: 32, 128>}, {pipeline_mode = #tpu.pipeline_mode<synchronous>, transform_indices = @transform_9, window_bounds = array<i64: 1, 128>}, {pipeline_mode = #tpu.pipeline_mode<synchronous>, transform_indices = @transform_10, window_bounds = array<i64: 128, 32>}, {pipeline_mode = #tpu.pipeline_mode<synchronous>, transform_indices = @transform_11, window_bounds = array<i64: 1, 32>}, {transform_indices = @transform_12, window_bounds = array<i64: 1, 8, 32>}]} {
    %c0 = arith.constant 0 : index
    %c0_0 = arith.constant 0 : index
    %c0_1 = arith.constant 0 : index
    %0 = vector.load %arg1[%c0, %c0_0, %c0_1] : memref<1x8x32xf32, #tpu.memory_space<vmem>>, vector<1x8x32xf32>
    %1 = vector.shape_cast %0 : vector<1x8x32xf32> to vector<8x32xf32>
    %c0_2 = arith.constant 0 : index
    %c0_3 = arith.constant 0 : index
    %2 = vector.load %arg2[%c0_2, %c0_3] : memref<1x32xf32, #tpu.memory_space<vmem>>, vector<1x32xf32>
    %c0_4 = arith.constant 0 : index
    %c0_5 = arith.constant 0 : index
    %3 = vector.load %arg3[%c0_4, %c0_5] : memref<1x32xf32, #tpu.memory_space<vmem>>, vector<1x32xf32>
    %cst = arith.constant dense<0.000000e+00> : vector<8xf32>
    %4 = vector.multi_reduction <add>, %1, %cst [1] : vector<8x32xf32> to vector<8xf32>
    %5 = vector.shape_cast %4 : vector<8xf32> to vector<8x1xf32>
    %cst_6 = arith.constant 3.200000e+01 : f32
    %6 = vector.broadcast %cst_6 : f32 to vector<8x1xf32>
    %7 = arith.divf %5, %6 : vector<8x1xf32>
    %8 = vector.broadcast %7 : vector<8x1xf32> to vector<8x32xf32>
    %9 = arith.subf %1, %8 : vector<8x32xf32>
    %10 = arith.mulf %9, %9 : vector<8x32xf32>
    %cst_7 = arith.constant dense<0.000000e+00> : vector<8xf32>
    %11 = vector.multi_reduction <add>, %10, %cst_7 [1] : vector<8x32xf32> to vector<8xf32>
    %12 = vector.shape_cast %11 : vector<8xf32> to vector<8x1xf32>
    %cst_8 = arith.constant 3.200000e+01 : f32
    %13 = vector.broadcast %cst_8 : f32 to vector<8x1xf32>
    %14 = arith.divf %12, %13 : vector<8x1xf32>
    %15 = vector.broadcast %7 : vector<8x1xf32> to vector<8x32xf32>
    %16 = arith.subf %1, %15 : vector<8x32xf32>
    %cst_9 = arith.constant 9.99999974E-6 : f32
    %17 = vector.broadcast %cst_9 : f32 to vector<8x1xf32>
    %18 = arith.addf %14, %17 : vector<8x1xf32>
    %19 = math.rsqrt %18 : vector<8x1xf32>
    %20 = vector.broadcast %19 : vector<8x1xf32> to vector<8x32xf32>
    %21 = arith.mulf %16, %20 : vector<8x32xf32>
    %22 = vector.broadcast %2 : vector<1x32xf32> to vector<8x32xf32>
    %23 = arith.mulf %21, %22 : vector<8x32xf32>
    %24 = vector.broadcast %3 : vector<1x32xf32> to vector<8x32xf32>
    %25 = arith.addf %23, %24 : vector<8x32xf32>
    %26 = arith.truncf %25 : vector<8x32xf32> to vector<8x32xbf16>
    %c0_10 = arith.constant 0 : index
    %c0_11 = arith.constant 0 : index
    %27 = vector.load %arg4[%c0_10, %c0_11] : memref<32x96xbf16, #tpu.memory_space<vmem>>, vector<32x96xbf16>
    %cst_12 = arith.constant dense<0.000000e+00> : vector<8x96xf32>
    %28 = tpu.matmul %26, %27, %cst_12 {dimension_numbers = #tpu.dot_dimension_numbers<[1], [0], [0], [1], [0, 0, 1, 1], [], []>} : vector<8x32xbf16>, vector<32x96xbf16>, vector<8x96xf32> -> vector<8x96xf32>
    %29 = arith.truncf %28 : vector<8x96xf32> to vector<8x96xbf16>
    %30 = vector.extract_strided_slice %29 {offsets = [0, 0], sizes = [8, 32], strides = [1, 1]} : vector<8x96xbf16> to vector<8x32xbf16>
    %31 = vector.extract_strided_slice %29 {offsets = [0, 32], sizes = [8, 32], strides = [1, 1]} : vector<8x96xbf16> to vector<8x32xbf16>
    %32 = vector.extract_strided_slice %29 {offsets = [0, 64], sizes = [8, 32], strides = [1, 1]} : vector<8x96xbf16> to vector<8x32xbf16>
    %33 = vector.shape_cast %30 : vector<8x32xbf16> to vector<1x8x4x8xbf16>
    %34 = tpu.transpose %33, [0, 2, 1, 3] : vector<1x8x4x8xbf16> -> vector<1x4x8x8xbf16>
    %35 = vector.shape_cast %34 : vector<1x4x8x8xbf16> to vector<4x8x8xbf16>
    %36 = vector.shape_cast %31 : vector<8x32xbf16> to vector<1x8x4x8xbf16>
    %37 = tpu.transpose %36, [0, 2, 1, 3] : vector<1x8x4x8xbf16> -> vector<1x4x8x8xbf16>
    %38 = vector.shape_cast %37 : vector<1x4x8x8xbf16> to vector<4x8x8xbf16>
    %39 = vector.shape_cast %32 : vector<8x32xbf16> to vector<1x8x4x8xbf16>
    %40 = tpu.transpose %39, [0, 2, 1, 3] : vector<1x8x4x8xbf16> -> vector<1x4x8x8xbf16>
    %41 = vector.shape_cast %40 : vector<1x4x8x8xbf16> to vector<4x8x8xbf16>
    %cst_13 = arith.constant dense<0.000000e+00> : vector<4x8x8xf32>
    %42 = tpu.matmul %35, %38, %cst_13 {dimension_numbers = #tpu.dot_dimension_numbers<[2], [2], [1], [1], [0, 0, 0, 1, 1, 1], [0], [0]>} : vector<4x8x8xbf16>, vector<4x8x8xbf16>, vector<4x8x8xf32> -> vector<4x8x8xf32>
    %43 = tpu.iota {dimensions = array<i32: 0>} : vector<8x8xi32>
    %44 = tpu.iota {dimensions = array<i32: 1>} : vector<8x8xi32>
    %45 = arith.cmpi sge, %43, %44 : vector<8x8xi32>
    %cst_14 = arith.constant 0.000000e+00 : f32
    %cst_15 = arith.constant -1.000000e+30 : f32
    %46 = vector.broadcast %cst_14 : f32 to vector<8x8xf32>
    %47 = vector.broadcast %cst_15 : f32 to vector<8x8xf32>
    %48 = arith.select %45, %46, %47 : vector<8x8xi1>, vector<8x8xf32>
    %49 = vector.shape_cast %48 : vector<8x8xf32> to vector<1x8x8xf32>
    %50 = vector.broadcast %49 : vector<1x8x8xf32> to vector<4x8x8xf32>
    %51 = arith.addf %42, %50 : vector<4x8x8xf32>
    %cst_16 = arith.constant dense<0xFF800000> : vector<4x8xf32>
    %52 = vector.multi_reduction <maximumf>, %51, %cst_16 [2] : vector<4x8x8xf32> to vector<4x8xf32>
    %53 = vector.shape_cast %52 : vector<4x8xf32> to vector<4x8x1xf32>
    %54 = vector.broadcast %53 : vector<4x8x1xf32> to vector<4x8x8xf32>
    %55 = arith.subf %51, %54 : vector<4x8x8xf32>
    %56 = math.exp %55 : vector<4x8x8xf32>
    %cst_17 = arith.constant dense<0.000000e+00> : vector<4x8xf32>
    %57 = vector.multi_reduction <add>, %56, %cst_17 [2] : vector<4x8x8xf32> to vector<4x8xf32>
    %58 = vector.shape_cast %57 : vector<4x8xf32> to vector<4x8x1xf32>
    %59 = arith.truncf %56 : vector<4x8x8xf32> to vector<4x8x8xbf16>
    %cst_18 = arith.constant dense<0.000000e+00> : vector<4x8x8xf32>
    %60 = tpu.matmul %59, %41, %cst_18 {dimension_numbers = #tpu.dot_dimension_numbers<[2], [1], [1], [2], [0, 0, 0, 1, 1, 2], [0], [0]>} : vector<4x8x8xbf16>, vector<4x8x8xbf16>, vector<4x8x8xf32> -> vector<4x8x8xf32>
    %61 = tpu.reciprocal %58 {approx = true} : vector<4x8x1xf32> -> vector<4x8x1xf32>
    %62 = vector.broadcast %61 : vector<4x8x1xf32> to vector<4x8x8xf32>
    %63 = arith.mulf %60, %62 : vector<4x8x8xf32>
    %64 = arith.truncf %63 : vector<4x8x8xf32> to vector<4x8x8xbf16>
    %65 = vector.shape_cast %64 : vector<4x8x8xbf16> to vector<1x4x8x8xbf16>
    %66 = tpu.transpose %65, [0, 2, 1, 3] : vector<1x4x8x8xbf16> -> vector<1x8x4x8xbf16>
    %67 = vector.shape_cast %66 : vector<1x8x4x8xbf16> to vector<8x32xbf16>
    %c0_19 = arith.constant 0 : index
    %c0_20 = arith.constant 0 : index
    %68 = vector.load %arg5[%c0_19, %c0_20] : memref<32x32xbf16, #tpu.memory_space<vmem>>, vector<32x32xbf16>
    %cst_21 = arith.constant dense<0.000000e+00> : vector<8x32xf32>
    %69 = tpu.matmul %67, %68, %cst_21 {dimension_numbers = #tpu.dot_dimension_numbers<[1], [0], [0], [1], [0, 0, 1, 1], [], []>} : vector<8x32xbf16>, vector<32x32xbf16>, vector<8x32xf32> -> vector<8x32xf32>
    %c0_22 = arith.constant 0 : index
    %c0_23 = arith.constant 0 : index
    %70 = vector.load %arg6[%c0_22, %c0_23] : memref<1x32xf32, #tpu.memory_space<vmem>>, vector<1x32xf32>
    %71 = vector.broadcast %70 : vector<1x32xf32> to vector<8x32xf32>
    %72 = arith.addf %69, %71 : vector<8x32xf32>
    %73 = arith.addf %1, %72 : vector<8x32xf32>
    %c0_24 = arith.constant 0 : index
    %c0_25 = arith.constant 0 : index
    %74 = vector.load %arg7[%c0_24, %c0_25] : memref<1x32xf32, #tpu.memory_space<vmem>>, vector<1x32xf32>
    %c0_26 = arith.constant 0 : index
    %c0_27 = arith.constant 0 : index
    %75 = vector.load %arg8[%c0_26, %c0_27] : memref<1x32xf32, #tpu.memory_space<vmem>>, vector<1x32xf32>
    %cst_28 = arith.constant dense<0.000000e+00> : vector<8xf32>
    %76 = vector.multi_reduction <add>, %73, %cst_28 [1] : vector<8x32xf32> to vector<8xf32>
    %77 = vector.shape_cast %76 : vector<8xf32> to vector<8x1xf32>
    %cst_29 = arith.constant 3.200000e+01 : f32
    %78 = vector.broadcast %cst_29 : f32 to vector<8x1xf32>
    %79 = arith.divf %77, %78 : vector<8x1xf32>
    %80 = vector.broadcast %79 : vector<8x1xf32> to vector<8x32xf32>
    %81 = arith.subf %73, %80 : vector<8x32xf32>
    %82 = arith.mulf %81, %81 : vector<8x32xf32>
    %cst_30 = arith.constant dense<0.000000e+00> : vector<8xf32>
    %83 = vector.multi_reduction <add>, %82, %cst_30 [1] : vector<8x32xf32> to vector<8xf32>
    %84 = vector.shape_cast %83 : vector<8xf32> to vector<8x1xf32>
    %cst_31 = arith.constant 3.200000e+01 : f32
    %85 = vector.broadcast %cst_31 : f32 to vector<8x1xf32>
    %86 = arith.divf %84, %85 : vector<8x1xf32>
    %87 = vector.broadcast %79 : vector<8x1xf32> to vector<8x32xf32>
    %88 = arith.subf %73, %87 : vector<8x32xf32>
    %cst_32 = arith.constant 9.99999974E-6 : f32
    %89 = vector.broadcast %cst_32 : f32 to vector<8x1xf32>
    %90 = arith.addf %86, %89 : vector<8x1xf32>
    %91 = math.rsqrt %90 : vector<8x1xf32>
    %92 = vector.broadcast %91 : vector<8x1xf32> to vector<8x32xf32>
    %93 = arith.mulf %88, %92 : vector<8x32xf32>
    %94 = vector.broadcast %74 : vector<1x32xf32> to vector<8x32xf32>
    %95 = arith.mulf %93, %94 : vector<8x32xf32>
    %96 = vector.broadcast %75 : vector<1x32xf32> to vector<8x32xf32>
    %97 = arith.addf %95, %96 : vector<8x32xf32>
    %98 = arith.truncf %97 : vector<8x32xf32> to vector<8x32xbf16>
    %c0_33 = arith.constant 0 : index
    %c0_34 = arith.constant 0 : index
    %99 = vector.load %arg9[%c0_33, %c0_34] : memref<32x128xbf16, #tpu.memory_space<vmem>>, vector<32x128xbf16>
    %cst_35 = arith.constant dense<0.000000e+00> : vector<8x128xf32>
    %100 = tpu.matmul %98, %99, %cst_35 {dimension_numbers = #tpu.dot_dimension_numbers<[1], [0], [0], [1], [0, 0, 1, 1], [], []>} : vector<8x32xbf16>, vector<32x128xbf16>, vector<8x128xf32> -> vector<8x128xf32>
    %c0_36 = arith.constant 0 : index
    %c0_37 = arith.constant 0 : index
    %101 = vector.load %arg10[%c0_36, %c0_37] : memref<1x128xf32, #tpu.memory_space<vmem>>, vector<1x128xf32>
    %102 = vector.broadcast %101 : vector<1x128xf32> to vector<8x128xf32>
    %103 = arith.addf %100, %102 : vector<8x128xf32>
    %cst_38 = arith.constant 0.000000e+00 : f32
    %104 = vector.broadcast %cst_38 : f32 to vector<8x128xf32>
    %105 = arith.maximumf %103, %104 : vector<8x128xf32>
    %106 = arith.truncf %105 : vector<8x128xf32> to vector<8x128xbf16>
    %c0_39 = arith.constant 0 : index
    %c0_40 = arith.constant 0 : index
    %107 = vector.load %arg11[%c0_39, %c0_40] : memref<128x32xbf16, #tpu.memory_space<vmem>>, vector<128x32xbf16>
    %cst_41 = arith.constant dense<0.000000e+00> : vector<8x32xf32>
    %108 = tpu.matmul %106, %107, %cst_41 {dimension_numbers = #tpu.dot_dimension_numbers<[1], [0], [0], [1], [0, 0, 1, 1], [], []>} : vector<8x128xbf16>, vector<128x32xbf16>, vector<8x32xf32> -> vector<8x32xf32>
    %c0_42 = arith.constant 0 : index
    %c0_43 = arith.constant 0 : index
    %109 = vector.load %arg12[%c0_42, %c0_43] : memref<1x32xf32, #tpu.memory_space<vmem>>, vector<1x32xf32>
    %110 = vector.broadcast %109 : vector<1x32xf32> to vector<8x32xf32>
    %111 = arith.addf %108, %110 : vector<8x32xf32>
    %112 = arith.addf %73, %111 : vector<8x32xf32>
    %113 = vector.shape_cast %112 : vector<8x32xf32> to vector<1x8x32xf32>
    %c0_44 = arith.constant 0 : index
    %c0_45 = arith.constant 0 : index
    %c0_46 = arith.constant 0 : index
    %114 = vector.load %arg13[%c0_44, %c0_45, %c0_46] : memref<1x8x32xf32, #tpu.memory_space<vmem>>, vector<1x8x32xf32>
    tpu.vector_store %arg13[%c0_44, %c0_45, %c0_46], %113 {strides = array<i32>} : memref<1x8x32xf32, #tpu.memory_space<vmem>>, vector<1x8x32xf32>,
    return
  }
  func.func @transform_0(%arg0: i32) -> (i32, i32, i32) {
    %c0_i32 = arith.constant 0 : i32
    %c0_i32_0 = arith.constant 0 : i32
    %c0_i32_1 = arith.constant 0 : i32
    return %arg0, %c0_i32, %c0_i32_0 : i32, i32, i32
  }
  func.func @transform_1(%arg0: i32) -> (i32, i32) {
    %c0_i32 = arith.constant 0 : i32
    %c0_i32_0 = arith.constant 0 : i32
    %c0_i32_1 = arith.constant 0 : i32
    return %c0_i32, %c0_i32_0 : i32, i32
  }
  func.func @transform_2(%arg0: i32) -> (i32, i32) {
    %c0_i32 = arith.constant 0 : i32
    %c0_i32_0 = arith.constant 0 : i32
    %c0_i32_1 = arith.constant 0 : i32
    return %c0_i32, %c0_i32_0 : i32, i32
  }
  func.func @transform_3(%arg0: i32) -> (i32, i32) {
    %c0_i32 = arith.constant 0 : i32
    %c0_i32_0 = arith.constant 0 : i32
    %c0_i32_1 = arith.constant 0 : i32
    return %c0_i32, %c0_i32_0 : i32, i32
  }
  func.func @transform_4(%arg0: i32) -> (i32, i32) {
    %c0_i32 = arith.constant 0 : i32
    %c0_i32_0 = arith.constant 0 : i32
    %c0_i32_1 = arith.constant 0 : i32
    return %c0_i32, %c0_i32_0 : i32, i32
  }
  func.func @transform_5(%arg0: i32) -> (i32, i32) {
    %c0_i32 = arith.constant 0 : i32
    %c0_i32_0 = arith.constant 0 : i32
    %c0_i32_1 = arith.constant 0 : i32
    return %c0_i32, %c0_i32_0 : i32, i32
  }
  func.func @transform_6(%arg0: i32) -> (i32, i32) {
    %c0_i32 = arith.constant 0 : i32
    %c0_i32_0 = arith.constant 0 : i32
    %c0_i32_1 = arith.constant 0 : i32
    return %c0_i32, %c0_i32_0 : i32, i32
  }
  func.func @transform_7(%arg0: i32) -> (i32, i32) {
    %c0_i32 = arith.constant 0 : i32
    %c0_i32_0 = arith.constant 0 : i32
    %c0_i32_1 = arith.constant 0 : i32
    return %c0_i32, %c0_i32_0 : i32, i32
  }
  func.func @transform_8(%arg0: i32) -> (i32, i32) {
    %c0_i32 = arith.constant 0 : i32
    %c0_i32_0 = arith.constant 0 : i32
    %c0_i32_1 = arith.constant 0 : i32
    return %c0_i32, %c0_i32_0 : i32, i32
  }
  func.func @transform_9(%arg0: i32) -> (i32, i32) {
    %c0_i32 = arith.constant 0 : i32
    %c0_i32_0 = arith.constant 0 : i32
    %c0_i32_1 = arith.constant 0 : i32
    return %c0_i32, %c0_i32_0 : i32, i32
  }
  func.func @transform_10(%arg0: i32) -> (i32, i32) {
    %c0_i32 = arith.constant 0 : i32
    %c0_i32_0 = arith.constant 0 : i32
    %c0_i32_1 = arith.constant 0 : i32
    return %c0_i32, %c0_i32_0 : i32, i32
  }
  func.func @transform_11(%arg0: i32) -> (i32, i32) {
    %c0_i32 = arith.constant 0 : i32
    %c0_i32_0 = arith.constant 0 : i32
    %c0_i32_1 = arith.constant 0 : i32
    return %c0_i32, %c0_i32_0 : i32, i32
  }
  func.func @transform_12(%arg0: i32) -> (i32, i32, i32) {
    %c0_i32 = arith.constant 0 : i32
    %c0_i32_0 = arith.constant 0 : i32
    %c0_i32_1 = arith.constant 0 : i32
    return %arg0, %c0_i32, %c0_i32_0 : i32, i32, i32
  }
}

</mosaic_0001>

<bundles_post_ra>
// kernel: tpu_custom_call.1
= control target key start
LH: loop header
LB: loop body
LE: loop exit
PB: predicated region body
PF: predicated region fallthrough
CT: control target
= control target key end

     0   :  { %s2751_s0 = inlined_call_operand.vmem [shape: f32[2,8,32], index: 0, kind: input, shape index: {}]   ;;  %s2752_s1 = inlined_call_operand.vmem [shape: f32[1,32], index: 1, kind: input, shape index: {}]   ;;  %s2753_s2 = inlined_call_operand.vmem [shape: f32[1,32], index: 2, kind: input, shape index: {}]   ;;  %s2754_s3 = inlined_call_operand.vmem [shape: bf16[32,96], index: 3, kind: input, shape index: {}]   ;;  %s2755_s4 = inlined_call_operand.vmem [shape: bf16[32,32], index: 4, kind: input, shape index: {}]   ;;  %s2756_s5 = inlined_call_operand.vmem [shape: f32[1,32], index: 5, kind: input, shape index: {}]   ;;  %s2757_s6 = inlined_call_operand.vmem [shape: f32[1,32], index: 6, kind: input, shape index: {}]   ;;  %s2758_s7 = inlined_call_operand.vmem [shape: f32[1,32], index: 7, kind: input, shape index: {}]   ;;  %s2759_s8 = inlined_call_operand.vmem [shape: bf16[32,128], index: 8, kind: input, shape index: {}]   ;;  %s2760_s9 = inlined_call_operand.vmem [shape: f32[1,128], index: 9, kind: input, shape index: {}]   ;;  %s2761_s10 = inlined_call_operand.vmem [shape: bf16[128,32], index: 10, kind: input, shape index: {}]   ;;  %s2762_s11 = inlined_call_operand.vmem [shape: f32[1,32], index: 11, kind: input, shape index: {}]   ;;  %s2763_s12 = inlined_call_operand.hbm [shape: f32[2,8,32], index: 12, kind: output, shape index: {}]  }
   0x1   :  { %2764 = sst [smem:[#allocation5_spill]] %s2751_s0 }
   0x2   :  { %2765 = sst [smem:[#allocation6_spill]] %s2752_s1 }
   0x3   :  { %17 = vsyncpa [#allocation3], 0 }
   0x4   :  { %19 = vsyncpa [#allocation3 + $0x1], 0  ;;  %s2361_s21 = smov 0   ;;  %s2363_s22 = smov 0  }
   0x5   :  { %s2365_s23 = smov 0   ;;  %s2367_s24 = smov 0  }
   0x6 LB: > { %s2382_s25 = sadd.s32 4294967295, %s2279_s24   ;;  %s1962_s26 = sadd.s32 4294967294, %s2279_s24   ;;  %s2279_s24 = sphi %s2367_s24, %s2773_s24   ;;  %s2275_s23 = sphi %s2365_s23, %s2772_s23   ;;  %s2271_s22 = sphi %s2363_s22, %s2771_s22   ;;  %s2267_s21 = sphi %s2361_s21, %s2770_s21  }
   0x7   : > { %s2386_s27 = sadd.s32 1, %s2279_s24   ;;  %s289_s28 = sadd.s32 1, %s2275_s23 }
   0x8   : > { %s286_s29 = ssub.s32 %s2279_s24, %s2386_s27  ;;  %p299_p0 = scmp.ne.s32.totalorder %s2275_s23, %s2271_s22 }
   0x9   : > { %p287_p1 = scmp.eq.s32.totalorder %s286_s29, 0  ;;  %p300_p2 = scmp.eq.s32.totalorder %s2382_s25, 1 }
   0xa   : > { %p305_p3 = scmp.ne.s32.totalorder %s2271_s22, %s2267_s21  ;;  %p306_p4 = scmp.eq.s32.totalorder %s1962_s26, 1 }
   0xb   : > { %s2397_s30 = scalar_select %p287_p1, %s2275_s23, %s289_s28  }
   0xc   : > { %p2399_p5 = por %p300_p2, %p299_p0  ;;  %p2403_p6 = por %p306_p4, %p305_p3 }
   0xd   : > { %p1965_p7 = scmp.ge.s32.totalorder %s2279_s24, 1  ;;  %p364_p8 = scmp.lt.s32.totalorder %s2279_s24, 3 }
   0xf   : > { %p365_p9 = pnand %p1965_p7, %p364_p8 }
  0x10   : > { %p405_p10 = scmp.lt.s32.totalorder (!%p365_p9), %s2382_s25, 1  ;;  %vm413_vm0 = vcmask (!%p365_p9), 261120   ;;  %s2768_s0 = sld [smem:[#allocation5_spill]] (!%p365_p9)  ;;  %v2183_v7 = vld [vmem:[%s2754_s3] sm:$0xff] (!%p365_p9)   ;;  %v2281_v8 = vmov (!%p365_p9), 0.0   ;;  %vm2282_vm1 = vmmov (!%p365_p9), 0   ;;  %v513_v30 = vlaneseq (!%p365_p9) }
  0x11   : > { %368 = sbr.rel (%p365_p9) target bundleno = 2602 (0xa2a), region = 68  ;;  %2038 = vmatprep.subr.bf16.mxu0 (!%p365_p9), %v2281_v8  ;;  %2042 = vmatprep.mubr.msk.bf16.mxu0 (!%p365_p9), %vm2282_vm1, %v2281_v8  ;;  %v2184_v9 = vld [vmem:[%s2754_s3 + $0x8] sm:$0xff] (!%p365_p9)   ;;  %s2769_s1 = sld [smem:[#allocation6_spill]] (!%p365_p9)  ;;  %v1969_v16 = vld [vmem:[%s2753_s2] ss:$0 sm:$0xff] (!%p365_p9)  ;;  %v2290_v55 = vmov (!%p365_p9), 0  }
  0x12   : > { %2039 = vmatpush3.bf16.msra.mxu0 (!%p365_p9), %v2183_v7  ;;  %2058 = vmatprep.subr.bf16.mxu1 (!%p365_p9), %v2281_v8  ;;  %s2284_s20 = smov (!%p365_p9), 120   ;;  %s2285_s26 = smov (!%p365_p9), 112   ;;  %v2288_v28 = vmov (!%p365_p9), 1983009808   ;;  %v2454_v32 = vshrl.u32 (!%p365_p9), %v513_v30, 7  ;;  %vm1017_vm2 = vcmask (!%p365_p9), 64512  }
  0x13   : > { %2040 = vmatprep.subr.bf16.mxu0 (!%p365_p9), %v2281_v8  ;;  %2060 = vmatprep.mubr.msk.bf16.mxu1 (!%p365_p9), %vm2282_vm1, %v2281_v8  ;;  %s2286_s28 = smov (!%p365_p9), 96   ;;  %s2287_s29 = smov (!%p365_p9), 64   ;;  %v511_v29 = vunpack.c.l.s4 (!%p365_p9), %v2288_v28  ;;  %v2289_v33 = vmov (!%p365_p9), 1934713408   ;;  %vm1245_vm4 = vcmask (!%p365_p9), 1043456   ;;  %vm1606_vm5 = vcmask (!%p365_p9), 130048  }
  0x14   : > { %v528_v34 = vunpack.c.l.s4 (!%p365_p9), %v2289_v33  ;;  %vm1609_vm6 = vcmask (!%p365_p9), 195584   ;;  %s2001_s18 = sshll.u32 (!%p365_p9), %s2382_s25, 7 }
  0x15   : > { %v512_v31 = vunpack.c.0.s8 (!%p365_p9), %v511_v29 }
  0x16   : > { %2041 = vmatpush3.bf16.msra.mxu0 (!%p365_p9), %v2184_v9  ;;  %v529_v38 = vunpack.c.0.s8 (!%p365_p9), %v528_v34 }
  0x17   : > { %2046 = vmatprep.subr.bf16.mxu0 (!%p365_p9), %v2281_v8  ;;  %v1968_v14 = vld [vmem:[%s2769_s1] ss:$0 sm:$0xff] (!%p365_p9)  ;;  %v2457_v35 = vsub.s32 (!%p365_p9), %v512_v31, %v2454_v32 }
  0x18   : > { %s406_s15 = scalar_select %p405_p10, %s2382_s25, 1  ;;  %v2467_v44 = vsub.s32 %v529_v38, %v2454_v32 }
  0x1a   : > { %s1967_s16 = sshll.u32 %s406_s15, 3 }
  0x1b   : > { %s408_s19 = scalar_lea.vmem %s2768_s0, %s1967_s16  ;;  %s2708_s0 = scalar_lea.hbm %s2763_s12, %s2001_s18 }
  0x1c   : > { %v2414_v0 = vld [vmem:[%s408_s19] sm:$0xff]  ;;  %s2283_s19 = smov 104   ;;  %s2295_s16 = smov [#allocation2]  }
  0x1d   : > { %v414_v1 = vsel %vm413_vm0, %v2414_v0, 0.0  ;;  %s2221_s17 = sshll.u32 %s2295_s16, 4  ;;  %s2222_s17 = int_to_ptr.vmem [resolvable:$false] %s2221_s17 }
  0x1e   : > { %415 = vadd.xlane.f32.xlu0 %v414_v1  ;;  %s2223_s1 = scalar_lea.vmem %s2222_s17, 256 }
  0xab   : > { %v416_v2 = vpop.xlane.xlu0 %415 }
  0xac   : > { %v418_v3 = vmul.f32 0.03125, %v416_v2 }
  0xae   : > { %v419_v4 = vsub.f32 %v2414_v0, %v418_v3 }
  0xb0   : > { %v420_v5 = vmul.f32 %v419_v4, %v419_v4 }
  0xb2   : > { %v421_v6 = vsel %vm413_vm0, %v420_v5, 0.0 }
  0xb3   : > { %422 = vadd.xlane.f32.xlu0 %v421_v6 }
 0x140   : > { %v423_v10 = vpop.xlane.xlu0 %422 }
 0x141   : > { %v424_v11 = vmul.f32 0.03125, %v423_v10 }
 0x143   : > { %v425_v12 = vadd.f32 1e-05, %v424_v11 }
 0x145   : > { %2197 = vrsqrt.f32 %v425_v12 }
 0x14f   : > { %v2198_v13 = vpop.eup %2197 }
 0x150   : > { %v427_v15 = vmul.f32 %v2198_v13, %v419_v4 }
 0x152   : > { %v434_v17 = vmul.f32 %v1968_v14, %v427_v15 }
 0x154   : > { %v441_v18 = vadd.f32 %v1969_v16, %v434_v17 }
 0x156   : > { %v442_v19 = vpack.c.bf16 %v441_v18, %v441_v18 }
 0x158   : > { %2043 = vmatmul.mubr.msk.bf16.vlgmr.msra.gmra.mrb[0].mxu0 %vm413_vm0, %v442_v19 }
 0x159   : > { %2048 = vmatprep.mubr.msk.bf16.mxu0 %vm2282_vm1, %v2281_v8 }
 0x22b   : > { %v496_v20 = vpop.f32.mrb[0].mxu0 }
 0x22c   : > { %v502_v21 = vpack.c.bf16 %v496_v20, %v496_v20  ;;  %v2044_v22 = vpop.f32.mrb[1].mxu0 }
 0x22d   : > { %v499_v23 = vpop.f32.mrb[2].mxu0 }
 0x22e   : > { %508 = vrot.lane.b32.xlu0 %v502_v21, %s2283_s19  ;;  %504 = vrot.lane.b32.xlu1 %v502_v21, %s2284_s20  ;;  %v2045_v24 = vpop.f32.mrb[3].mxu0  ;;  %v516_v41 = vrot.slane %v502_v21, %v2457_v35  ;;  %s2292_s19 = smov 8   ;;  %s2293_s20 = smov 16  }
 0x232   : > { %506 = vrot.lane.b32.xlu1 %v502_v21, %s2285_s26  ;;  %s2294_s26 = smov 24  }
 0x236   : > { %671 = vrot.lane.b32.xlu1 %v502_v21, %s2286_s28 }
 0x2a0   : > { %v2443_v25 = vpop.permute.xlu1 %504  ;;  %v2449_v27 = vpop.permute.xlu0 %508 }
 0x2a1   : > { %673 = vrot.lane.b32.xlu1 %v2443_v25, %s2286_s28  ;;  %v558_v37 = vrot.slane %v2449_v27, %v2457_v35  ;;  %v550_v39 = vrot.slane %v2443_v25, %v2457_v35 }
 0x2a3   : > { %v559_v45 = vcombine.low %v550_v39, %v558_v37  ;;  %v560_v47 = vcombine.high %v550_v39, %v558_v37 }
 0x2a4   : > { %v2446_v26 = vpop.permute.xlu1 %506 }
 0x2a5   : > { %675 = vrot.lane.b32.xlu1 %v2446_v26, %s2286_s28  ;;  %v524_v36 = vrot.slane %v2446_v26, %v2457_v35  ;;  %v2476_v50 = vrot.slane %v559_v45, %v2467_v44  ;;  %v2479_v52 = vrot.slane %v560_v47, %v2467_v44 }
 0x2a7   : > { %v525_v42 = vcombine.low %v516_v41, %v524_v36  ;;  %v526_v43 = vcombine.high %v516_v41, %v524_v36  ;;  %v575_v60 = vcombine.high %v2476_v50, %v2290_v55  ;;  %v576_v62 = vcombine.high %v2479_v52, %v2290_v55 }
 0x2a8   : > { %v672_v40 = vpop.permute.xlu1 %671  ;;  %v582_v5 = vshrl.u32 %v2476_v50, 16  ;;  %v598_v11 = vshrl.u32 %v2479_v52, 16 }
 0x2a9   : > { %677 = vrot.lane.b32.xlu1 %v2449_v27, %s2286_s28  ;;  %v2470_v48 = vrot.slane %v525_v42, %v2467_v44  ;;  %v2473_v49 = vrot.slane %v526_v43, %v2467_v44  ;;  %v686_v53 = vrot.slane %v672_v40, %v2457_v35  ;;  %v590_v10 = vshrl.u32 %v575_v60, 16 }
 0x2aa   : > { %v606_v14 = vshrl.u32 %v576_v62, 16 }
 0x2ab   : > { %v541_v56 = vcombine.high %v2470_v48, %v2290_v55  ;;  %v542_v57 = vcombine.high %v2473_v49, %v2290_v55  ;;  %v581_v63 = vshrl.u32 %v2470_v48, 16  ;;  %v597_v3 = vshrl.u32 %v2473_v49, 16 }
 0x2ad   : > { %841 = vrot.lane.b32.xlu1 %v502_v21, %s2287_s29  ;;  %v589_v6 = vshrl.u32 %v541_v56, 16  ;;  %v605_v7 = vshrl.u32 %v542_v57, 16  ;;  %v583_v15 = vpack.i.b16 %v582_v5, %v581_v63  ;;  %v587_v16 = vpack.i.b16 %v575_v60, %v541_v56 }
 0x2ae   : > { %v599_v18 = vpack.i.b16 %v598_v11, %v597_v3  ;;  %v603_v19 = vpack.i.b16 %v576_v62, %v542_v57  ;;  %v595_v57 = vpack.i.b16 %v2479_v52, %v2473_v49 }
 0x2af   : > { %v591_v22 = vpack.i.b16 %v590_v10, %v589_v6  ;;  %v607_v23 = vpack.i.b16 %v606_v14, %v605_v7 }
 0x2b0   : > { %v617_v63 = vcombine.low %v587_v16, %v603_v19 }
 0x2b2   : > { %v624_v49 = vrot.slane %v617_v63, %v2457_v35 }
 0x313   : > { %v674_v46 = vpop.permute.xlu1 %673 }
 0x314   : > { %v720_v4 = vrot.slane %v674_v46, %v2457_v35 }
 0x317   : > { %v676_v51 = vpop.permute.xlu1 %675 }
 0x318   : > { %v694_v54 = vrot.slane %v676_v51, %v2457_v35 }
 0x31a   : > { %v695_v58 = vcombine.low %v686_v53, %v694_v54  ;;  %v696_v59 = vcombine.high %v686_v53, %v694_v54  ;;  %v579_v53 = vpack.i.b16 %v2476_v50, %v2470_v48 }
 0x31b   : > { %v678_v61 = vpop.permute.xlu1 %677 }
 0x31c   : > { %v703_v1 = vrot.slane %v695_v58, %v2467_v44  ;;  %v728_v2 = vrot.slane %v678_v61, %v2457_v35  ;;  %v710_v9 = vrot.slane %v696_v59, %v2467_v44  ;;  %v642_v58 = vcombine.low %v591_v22, %v607_v23 }
 0x31e   : > { %v729_v12 = vcombine.low %v720_v4, %v728_v2  ;;  %v730_v13 = vcombine.high %v720_v4, %v728_v2  ;;  %v711_v17 = vcombine.high %v703_v1, %v2290_v55  ;;  %v712_v24 = vcombine.high %v710_v9, %v2290_v55 }
 0x31f   : > { %v751_v28 = vshrl.u32 %v703_v1, 16  ;;  %v767_v37 = vshrl.u32 %v710_v9, 16  ;;  %v609_v4 = vcombine.low %v579_v53, %v595_v57  ;;  %v649_v5 = vrot.slane %v642_v58, %v2457_v35 }
 0x320   : > { %v737_v20 = vrot.slane %v729_v12, %v2467_v44  ;;  %v744_v21 = vrot.slane %v730_v13, %v2467_v44  ;;  %v759_v36 = vshrl.u32 %v711_v17, 16  ;;  %v775_v45 = vshrl.u32 %v712_v24, 16 }
 0x322   : > { %v745_v29 = vcombine.high %v737_v20, %v2290_v55  ;;  %v746_v31 = vcombine.high %v744_v21, %v2290_v55  ;;  %v749_v33 = vpack.i.b16 %v737_v20, %v703_v1  ;;  %v752_v34 = vshrl.u32 %v737_v20, 16 }
 0x323   : > { %v765_v38 = vpack.i.b16 %v744_v21, %v710_v9  ;;  %v768_v39 = vshrl.u32 %v744_v21, 16  ;;  %v634_v1 = vcombine.low %v583_v15, %v599_v18  ;;  %v616_v9 = vrot.slane %v609_v4, %v2457_v35 }
 0x324   : > { %v753_v40 = vpack.i.b16 %v752_v34, %v751_v28  ;;  %v757_v41 = vpack.i.b16 %v745_v29, %v711_v17  ;;  %v760_v42 = vshrl.u32 %v745_v29, 16  ;;  %v773_v43 = vpack.i.b16 %v746_v31, %v712_v24 }
 0x325   : > { %v769_v46 = vpack.i.b16 %v768_v39, %v767_v37  ;;  %v776_v47 = vshrl.u32 %v746_v31, 16  ;;  %v779_v51 = vcombine.low %v749_v33, %v765_v38  ;;  %v641_v52 = vrot.slane %v634_v1, %v2457_v35 }
 0x326   : > { %v761_v54 = vpack.i.b16 %v760_v42, %v759_v36  ;;  %v787_v56 = vcombine.low %v757_v41, %v773_v43  ;;  %v625_v12 = vcombine.low %v616_v9, %v624_v49 }
 0x327   : > { %v777_v59 = vpack.i.b16 %v776_v47, %v775_v45  ;;  %v804_v60 = vcombine.low %v753_v40, %v769_v46  ;;  %v786_v61 = vrot.slane %v779_v51, %v2457_v35  ;;  %v650_v11 = vcombine.low %v641_v52, %v649_v5 }
 0x328   : > { %v794_v62 = vrot.slane %v787_v56, %v2457_v35  ;;  %v632_v21 = vrot.slane %v625_v12, %v2467_v44  ;;  %v1014_v46 = vand.u32 127, %v513_v30  ;;  %v2291_v47 = vmov -1e+30  }
 0x329   : > { %v812_v2 = vcombine.low %v761_v54, %v777_v59  ;;  %v811_v48 = vrot.slane %v804_v60, %v2457_v35  ;;  %v657_v18 = vrot.slane %v650_v11, %v2467_v44 }
 0x32a   : > { %v795_v3 = vcombine.low %v786_v61, %v794_v62  ;;  %v633_v29 = vcombine.high %v632_v21, %v2290_v55  ;;  %v662_v38 = vshrl.u32 %v632_v21, 16  ;;  %vm1015_vm3 = vcmp.ge.s32.totalorder %v2454_v32, %v1014_v46 }
 0x32b   : > { %v819_v50 = vrot.slane %v812_v2, %v2457_v35  ;;  %v658_v24 = vcombine.high %v657_v18, %v2290_v55  ;;  %v661_v28 = vpack.i.b16 %v657_v18, %v632_v21  ;;  %v663_v37 = vshrl.u32 %v657_v18, 16 }
 0x32c   : > { %v802_v6 = vrot.slane %v795_v3, %v2467_v44  ;;  %v668_v43 = vshrl.u32 %v633_v29, 16  ;;  %v1016_v51 = vsel %vm1015_vm3, 0.0, %v2291_v47 }
 0x32d   : > { %v820_v7 = vcombine.low %v811_v48, %v819_v50  ;;  %v667_v34 = vpack.i.b16 %v658_v24, %v633_v29  ;;  %v664_v40 = vpack.i.b16 %v663_v37, %v662_v38  ;;  %v669_v42 = vshrl.u32 %v658_v24, 16 }
 0x32e   : > { %v803_v14 = vcombine.high %v802_v6, %v2290_v55  ;;  %v832_v22 = vshrl.u32 %v802_v6, 16 }
 0x32f   : > { %v827_v10 = vrot.slane %v820_v7, %v2467_v44  ;;  %v670_v45 = vpack.i.b16 %v669_v42, %v668_v43 }
 0x330   : > { %v838_v36 = vshrl.u32 %v803_v14, 16 }
 0x331   : > { %v831_v13 = vpack.i.b16 %v827_v10, %v802_v6  ;;  %v828_v15 = vcombine.high %v827_v10, %v2290_v55  ;;  %v833_v19 = vshrl.u32 %v827_v10, 16  ;;  %v842_v10 = vpop.permute.xlu1 %841 }
 0x333   : > { %v1022_v16 = vsel %vm1017_vm2, %v831_v13, 0  ;;  %v837_v17 = vpack.i.b16 %v828_v15, %v803_v14  ;;  %v834_v23 = vpack.i.b16 %v833_v19, %v832_v22  ;;  %v839_v31 = vshrl.u32 %v828_v15, 16 }
 0x334   : > { %2047 = vmatpush3.bf16.xpose.msra.mxu0 %v1022_v16  ;;  %v856_v13 = vrot.slane %v842_v10, %v2457_v35 }
 0x335   : > { %v1114_v20 = vsel %vm1017_vm2, %v837_v17, 0  ;;  %2052 = vmatprep.subr.bf16.mxu0 %v2281_v8  ;;  %v1068_v33 = vsel %vm1017_vm2, %v834_v23, 0  ;;  %v840_v39 = vpack.i.b16 %v839_v31, %v838_v36 }
 0x336   : > { %2059 = vmatpush3.bf16.xpose.msra.mxu1 %v1114_v20 }
 0x337   : > { %2070 = vmatprep.subr.bf16.mxu1 %v2281_v8  ;;  %v1160_v41 = vsel %vm1017_vm2, %v840_v39, 0 }
 0x33b   : > { %2049 = vmatmul.mubr.msk.bf16.vlgmr.msra.gmra.mrb[4].mxu0 %vm1017_vm2, %v661_v28 }
 0x33c   : > { %2053 = vmatpush3.bf16.xpose.msra.mxu0 %v1068_v33  ;;  %2054 = vmatprep.mubr.msk.bf16.mxu0 %vm2282_vm1, %v2281_v8 }
 0x33d   : > { %2061 = vmatmul.mubr.msk.bf16.vlgmr.msra.gmra.mrb[0].mxu1 %vm1017_vm2, %v667_v34  ;;  %2064 = vmatprep.subr.bf16.mxu0 %v2281_v8 }
 0x33e   : > { %2072 = vmatprep.mubr.msk.bf16.mxu1 %vm2282_vm1, %v2281_v8 }
 0x343   : > { %2055 = vmatmul.mubr.msk.bf16.vlgmr.msra.gmra.mrb[8].mxu0 %vm1017_vm2, %v664_v40 }
 0x344   : > { %2065 = vmatpush3.bf16.xpose.msra.mxu0 %v1160_v41  ;;  %2066 = vmatprep.mubr.msk.bf16.mxu0 %vm2282_vm1, %v2281_v8 }
 0x345   : > { %2076 = vmatprep.subr.bf16.mxu0 %v2281_v8 }
 0x34b   : > { %2067 = vmatmul.mubr.msk.bf16.vlgmr.msra.gmra.mrb[12].mxu0 %vm1017_vm2, %v670_v45 }
 0x34c   : > { %2078 = vmatprep.mubr.msk.bf16.mxu0 %vm2282_vm1, %v2281_v8 }
 0x40e   : > { %v1058_v53 = vpop.f32.mrb[4].mxu0 }
 0x40f   : > { %v1059_v54 = vadd.f32 %v1058_v53, %v1016_v51  ;;  %v2050_v56 = vpop.f32.mrb[5].mxu0 }
 0x410   : > { %v1061_v57 = vpop.f32.mrb[6].mxu0  ;;  %v1150_v58 = vpop.f32.mrb[0].mxu1 }
 0x411   : > { %v2051_v59 = vpop.f32.mrb[7].mxu0  ;;  %v2062_v60 = vpop.f32.mrb[1].mxu1  ;;  %v1202_v61 = vsel %vm1017_vm2, %v1059_v54, -inf  ;;  %v2557_v6 = vadd.f32 %v1150_v58, %v1016_v51 }
 0x412   : > { %v1153_v62 = vpop.f32.mrb[2].mxu1  ;;  %1203 = vmax.xlane.f32.xlu1 %v1202_v61 }
 0x413   : > { %v2063_v63 = vpop.f32.mrb[3].mxu1  ;;  %v1208_v9 = vsel %vm1017_vm2, %v2557_v6, -inf }
 0x416   : > { %v1104_v1 = vpop.f32.mrb[8].mxu0 }
 0x417   : > { %v1105_v2 = vadd.f32 %v1104_v1, %v1016_v51  ;;  %v2056_v3 = vpop.f32.mrb[9].mxu0 }
 0x418   : > { %v1107_v30 = vpop.f32.mrb[10].mxu0 }
 0x419   : > { %v2057_v4 = vpop.f32.mrb[11].mxu0  ;;  %v1205_v32 = vsel %vm1017_vm2, %v1105_v2, -inf }
 0x41a   : > { %1206 = vmax.xlane.f32.xlu0 %v1205_v32 }
 0x41e   : > { %v1196_v5 = vpop.f32.mrb[12].mxu0 }
 0x41f   : > { %v2068_v48 = vpop.f32.mrb[13].mxu0  ;;  %v2555_v52 = vadd.f32 %v1196_v5, %v1016_v51 }
 0x420   : > { %v1199_v50 = vpop.f32.mrb[14].mxu0 }
 0x421   : > { %v2069_v49 = vpop.f32.mrb[15].mxu0  ;;  %v1211_v7 = vsel %vm1017_vm2, %v2555_v52, -inf }
 0x423   : > { %845 = vrot.lane.b32.xlu1 %v2446_v26, %s2287_s29 }
 0x427   : > { %847 = vrot.lane.b32.xlu1 %v2449_v27, %s2287_s29 }
 0x430   : > { %843 = vrot.lane.b32.xlu0 %v2443_v25, %s2287_s29  ;;  %s402_s29 = sand.u32 1, %s2271_s22  }
 0x431   : > { %s1966_s15 = sshll.u32 %s402_s29, 3  ;;  %s1890_s25 = scalar_lea.sflag [#allocation3], %s402_s29 }
 0x44b   : > { %1212 = vmax.xlane.f32.xlu1 %v1211_v7 }
 0x44f   : > { %1209 = vmax.xlane.f32.xlu0 %v1208_v9 }
 0x49f   : > { %v1204_v26 = vpop.xlane.xlu1 %1203 }
 0x4a0   : > { %v1214_v11 = vsub.f32 %v1059_v54, %v1204_v26 }
 0x4a2   : > { %v1218_v12 = vmul.f32 1.442695, %v1214_v11 }
 0x4a3   : > { %v846_v27 = vpop.permute.xlu1 %845 }
 0x4a4   : > { %2199 = vpow2.f32 %v1218_v12  ;;  %v864_v25 = vrot.slane %v846_v27, %v2457_v35 }
 0x4a6   : > { %v865_v14 = vcombine.low %v856_v13, %v864_v25  ;;  %v866_v17 = vcombine.high %v856_v13, %v864_v25 }
 0x4a7   : > { %v1207_v15 = vpop.xlane.xlu0 %1206  ;;  %v848_v18 = vpop.permute.xlu1 %847 }
 0x4a8   : > { %v1215_v16 = vsub.f32 %v1105_v2, %v1207_v15  ;;  %v873_v19 = vrot.slane %v865_v14, %v2467_v44  ;;  %v898_v22 = vrot.slane %v848_v18, %v2457_v35  ;;  %v880_v24 = vrot.slane %v866_v17, %v2467_v44 }
 0x4aa   : > { %v1220_v20 = vmul.f32 1.442695, %v1215_v16  ;;  %v881_v33 = vcombine.high %v873_v19, %v2290_v55  ;;  %v882_v38 = vcombine.high %v880_v24, %v2290_v55  ;;  %v921_v39 = vshrl.u32 %v873_v19, 16 }
 0x4ab   : > { %v844_v21 = vpop.permute.xlu0 %843  ;;  %v937_v46 = vshrl.u32 %v880_v24, 16 }
 0x4ac   : > { %v890_v23 = vrot.slane %v844_v21, %v2457_v35  ;;  %2201 = vpow2.f32 %v1220_v20  ;;  %v929_v45 = vshrl.u32 %v881_v33, 16  ;;  %v945_v58 = vshrl.u32 %v882_v38, 16 }
 0x4ae   : > { %v2200_v28 = vpop.eup %2199  ;;  %v899_v29 = vcombine.low %v890_v23, %v898_v22  ;;  %v900_v31 = vcombine.high %v890_v23, %v898_v22 }
 0x4af   : > { %v1226_v34 = vsel %vm1017_vm2, %v2200_v28, 0.0 }
 0x4b0   : > { %v907_v36 = vrot.slane %v899_v29, %v2467_v44  ;;  %v914_v37 = vrot.slane %v900_v31, %v2467_v44  ;;  %1227 = vadd.xlane.f32.xlu0 %v1226_v34 }
 0x4b2   : > { %v915_v40 = vcombine.high %v907_v36, %v2290_v55  ;;  %v916_v41 = vcombine.high %v914_v37, %v2290_v55  ;;  %v919_v42 = vpack.i.b16 %v907_v36, %v873_v19  ;;  %v922_v43 = vshrl.u32 %v907_v36, 16 }
 0x4b3   : > { %v935_v47 = vpack.i.b16 %v914_v37, %v880_v24  ;;  %v938_v51 = vshrl.u32 %v914_v37, 16  ;;  %v1238_v19 = vpack.c.bf16 %v2200_v28, %v2200_v28 }
 0x4b4   : > { %v923_v53 = vpack.i.b16 %v922_v43, %v921_v39  ;;  %v927_v54 = vpack.i.b16 %v915_v40, %v881_v33  ;;  %v930_v56 = vshrl.u32 %v915_v40, 16  ;;  %v943_v57 = vpack.i.b16 %v916_v41, %v882_v38 }
 0x4b5   : > { %v939_v59 = vpack.i.b16 %v938_v51, %v937_v46  ;;  %v946_v60 = vshrl.u32 %v916_v41, 16  ;;  %v949_v61 = vcombine.low %v919_v42, %v935_v47 }
 0x4b6   : > { %v931_v62 = vpack.i.b16 %v930_v56, %v929_v45  ;;  %v957_v63 = vcombine.low %v927_v54, %v943_v57  ;;  %v2202_v1 = vpop.eup %2201 }
 0x4b7   : > { %v947_v2 = vpack.i.b16 %v946_v60, %v945_v58  ;;  %v974_v3 = vcombine.low %v923_v53, %v939_v59  ;;  %v956_v30 = vrot.slane %v949_v61, %v2457_v35  ;;  %v1229_v4 = vsel %vm1017_vm2, %v2202_v1, 0.0 }
 0x4b8   : > { %v964_v32 = vrot.slane %v957_v63, %v2457_v35  ;;  %1230 = vadd.xlane.f32.xlu0 %v1229_v4  ;;  %v1239_v22 = vpack.c.bf16 %v2202_v1, %v2202_v1 }
 0x4b9   : > { %v982_v5 = vcombine.low %v931_v62, %v947_v2  ;;  %v981_v50 = vrot.slane %v974_v3, %v2457_v35 }
 0x4ba   : > { %v965_v48 = vcombine.low %v956_v30, %v964_v32 }
 0x4bb   : > { %v989_v49 = vrot.slane %v982_v5, %v2457_v35 }
 0x4bc   : > { %v972_v7 = vrot.slane %v965_v48, %v2467_v44 }
 0x4bd   : > { %v990_v9 = vcombine.low %v981_v50, %v989_v49 }
 0x4be   : > { %v973_v10 = vcombine.high %v972_v7, %v2290_v55  ;;  %v1002_v12 = vshrl.u32 %v972_v7, 16 }
 0x4bf   : > { %v997_v26 = vrot.slane %v990_v9, %v2467_v44 }
 0x4c0   : > { %v1008_v13 = vshrl.u32 %v973_v10, 16 }
 0x4c1   : > { %v1001_v11 = vpack.i.b16 %v997_v26, %v972_v7  ;;  %v1003_v27 = vshrl.u32 %v997_v26, 16  ;;  %v998_v25 = vcombine.high %v997_v26, %v2290_v55 }
 0x4c3   : > { %v1247_v14 = vsel %vm1245_vm4, %v1001_v11, 0  ;;  %v1004_v15 = vpack.i.b16 %v1003_v27, %v1002_v12  ;;  %v1007_v16 = vpack.i.b16 %v998_v25, %v973_v10  ;;  %v1009_v17 = vshrl.u32 %v998_v25, 16 }
 0x4c4   : > { %2071 = vmatpush3.bf16.msra.mxu1 %v1247_v14 }
 0x4c5   : > { %v1293_v18 = vsel %vm1245_vm4, %v1004_v15, 0  ;;  %2082 = vmatprep.subr.bf16.mxu1 %v2281_v8  ;;  %v1010_v20 = vpack.i.b16 %v1009_v17, %v1008_v13  ;;  %v1339_v21 = vsel %vm1245_vm4, %v1007_v16, 0 }
 0x4c6   : > { %2077 = vmatpush3.bf16.msra.mxu0 %v1293_v18 }
 0x4c7   : > { %2073 = vmatmul.mubr.msk.bf16.vlgmr.msra.gmra.mrb[4].mxu1 %vm1017_vm2, %v1238_v19  ;;  %2088 = vmatprep.subr.bf16.mxu0 %v2281_v8  ;;  %v1385_v23 = vsel %vm1245_vm4, %v1010_v20, 0 }
 0x4c8   : > { %2083 = vmatpush3.bf16.msra.mxu1 %v1339_v21  ;;  %2084 = vmatprep.mubr.msk.bf16.mxu1 %vm2282_vm1, %v2281_v8 }
 0x4c9   : > { %2079 = vmatmul.mubr.msk.bf16.vlgmr.msra.gmra.mrb[16].mxu0 %vm1017_vm2, %v1239_v22  ;;  %2094 = vmatprep.subr.bf16.mxu1 %v2281_v8 }
 0x4ca   : > { %2089 = vmatpush3.bf16.msra.mxu0 %v1385_v23  ;;  %2090 = vmatprep.mubr.msk.bf16.mxu0 %vm2282_vm1, %v2281_v8 }
 0x4cb   : > { %2102 = vmatprep.subr.bf16.mxu0 %v2281_v8 }
 0x4d8   : > { %v1213_v24 = vpop.xlane.xlu1 %1212 }
 0x4d9   : > { %v1217_v28 = vsub.f32 %v2555_v52, %v1213_v24 }
 0x4db   : > { %v1224_v29 = vmul.f32 1.442695, %v1217_v28 }
 0x4dc   : > { %v1210_v31 = vpop.xlane.xlu0 %1209 }
 0x4dd   : > { %2203 = vpow2.f32 %v1224_v29  ;;  %v1216_v33 = vsub.f32 %v2557_v6, %v1210_v31  ;;  %v2185_v6 = vld [vmem:[%s2755_s4] sm:$0xff]  }
 0x4df   : > { %v1222_v34 = vmul.f32 1.442695, %v1216_v33 }
 0x4e1   : > { %2205 = vpow2.f32 %v1222_v34 }
 0x4e7   : > { %v2204_v36 = vpop.eup %2203 }
 0x4e8   : > { %v1235_v37 = vsel %vm1017_vm2, %v2204_v36, 0.0  ;;  %v1241_v38 = vpack.c.bf16 %v2204_v36, %v2204_v36 }
 0x4e9   : > { %1236 = vadd.xlane.f32.xlu0 %v1235_v37 }
 0x4ea   : > { %2091 = vmatmul.mubr.msk.bf16.vlgmr.msra.gmra.mrb[20].mxu0 %vm1017_vm2, %v1241_v38 }
 0x4eb   : > { %v2206_v39 = vpop.eup %2205  ;;  %2106 = vmatprep.mubr.msk.bf16.mxu0 %vm2282_vm1, %v2281_v8 }
 0x4ec   : > { %v1232_v52 = vsel %vm1017_vm2, %v2206_v39, 0.0  ;;  %v1240_v40 = vpack.c.bf16 %v2206_v39, %v2206_v39 }
 0x4ed   : > { %1233 = vadd.xlane.f32.xlu1 %v1232_v52 }
 0x4ee   : > { %2085 = vmatmul.mubr.msk.bf16.vlgmr.msra.gmra.mrb[8].mxu1 %vm1017_vm2, %v1240_v40 }
 0x4ef   : > { %2098 = vmatprep.mubr.msk.bf16.mxu1 %vm2282_vm1, %v2281_v8  ;;  %2095 = vmatpush3.bf16.msra.mxu1 %v2185_v6 }
 0x4f0   : > { %2096 = vmatprep.subr.bf16.mxu1 %v2281_v8 }
 0x53d   : > { %v1228_v54 = vpop.xlane.xlu0 %1227 }
 0x545   : > { %v1231_v56 = vpop.xlane.xlu0 %1230 }
 0x546   : > { %2207 = vrcp.f32 %v1231_v56 }
 0x550   : > { %v2208_v59 = vpop.eup %2207 }
 0x576   : > { %v1237_v57 = vpop.xlane.xlu0 %1236 }
 0x577   : > { %2209 = vrcp.f32 %v1237_v57  ;;  %v2186_v57 = vld [vmem:[%s2755_s4 + $0x8] sm:$0xff]  }
 0x578   : > { %2211 = vrcp.f32 %v1228_v54  ;;  %2097 = vmatpush3.bf16.msra.mxu1 %v2186_v57 }
 0x579   : > { %2110 = vmatprep.subr.bf16.mxu1 %v2281_v8 }
 0x57a   : > { %v1234_v58 = vpop.xlane.xlu1 %1233 }
 0x57b   : > { %2213 = vrcp.f32 %v1234_v58 }
 0x581   : > { %v2210_v61 = vpop.eup %2209 }
 0x582   : > { %v2212_v63 = vpop.eup %2211 }
 0x585   : > { %v2214_v48 = vpop.eup %2213 }
 0x59a   : > { %v1283_v41 = vpop.f32.mrb[4].mxu1 }
 0x59b   : > { %v2074_v42 = vpop.f32.mrb[5].mxu1  ;;  %v1431_v30 = vmul.f32 %v2212_v63, %v1283_v41 }
 0x59c   : > { %v1286_v43 = vpop.f32.mrb[6].mxu1  ;;  %v1329_v45 = vpop.f32.mrb[16].mxu0 }
 0x59d   : > { %v2075_v46 = vpop.f32.mrb[7].mxu1  ;;  %v2080_v47 = vpop.f32.mrb[17].mxu0  ;;  %v1432_v60 = vmul.f32 %v2208_v59, %v1329_v45  ;;  %v1435_v26 = vpack.c.bf16 %v1431_v30, %v1431_v30 }
 0x59e   : > { %v1332_v51 = vpop.f32.mrb[18].mxu0 }
 0x59f   : > { %v2081_v53 = vpop.f32.mrb[19].mxu0  ;;  %v1469_v1 = vpack.c.bf16 %v1432_v60, %v1432_v60  ;;  %v1442_v16 = vrot.slane %v1435_v26, %v2457_v35 }
 0x5a1   : > { %v1476_v49 = vrot.slane %v1469_v1, %v2457_v35 }
 0x5bd   : > { %v1421_v62 = vpop.f32.mrb[20].mxu0 }
 0x5be   : > { %v1434_v2 = vmul.f32 %v2210_v61, %v1421_v62  ;;  %v2092_v3 = vpop.f32.mrb[21].mxu0 }
 0x5bf   : > { %v1424_v4 = vpop.f32.mrb[22].mxu0 }
 0x5c0   : > { %v1477_v32 = vpack.c.bf16 %v1434_v2, %v1434_v2  ;;  %v2093_v5 = vpop.f32.mrb[23].mxu0 }
 0x5c1   : > { %v1375_v50 = vpop.f32.mrb[8].mxu1 }
 0x5c2   : > { %v1484_v7 = vrot.slane %v1477_v32, %v2457_v35  ;;  %v1433_v9 = vmul.f32 %v2214_v48, %v1375_v50  ;;  %v2086_v10 = vpop.f32.mrb[9].mxu1 }
 0x5c3   : > { %v1378_v11 = vpop.f32.mrb[10].mxu1 }
 0x5c4   : > { %v1485_v12 = vcombine.low %v1476_v49, %v1484_v7  ;;  %v1486_v27 = vcombine.high %v1476_v49, %v1484_v7  ;;  %v1443_v25 = vpack.c.bf16 %v1433_v9, %v1433_v9  ;;  %v2087_v13 = vpop.f32.mrb[11].mxu1  ;;  %v1981_v11 = vld [vmem:[%s2756_s5] ss:$0 sm:$0xff] }
 0x5c6   : > { %v1493_v14 = vrot.slane %v1485_v12, %v2467_v44  ;;  %v1450_v15 = vrot.slane %v1443_v25, %v2457_v35  ;;  %v1500_v17 = vrot.slane %v1486_v27, %v2467_v44 }
 0x5c8   : > { %v1451_v18 = vcombine.low %v1442_v16, %v1450_v15  ;;  %v1452_v19 = vcombine.high %v1442_v16, %v1450_v15  ;;  %v1501_v20 = vcombine.high %v1493_v14, %v2290_v55  ;;  %v1502_v23 = vcombine.high %v1500_v17, %v2290_v55 }
 0x5c9   : > { %v1508_v24 = vshrl.u32 %v1493_v14, 16  ;;  %v1524_v36 = vshrl.u32 %v1500_v17, 16 }
 0x5ca   : > { %v1459_v21 = vrot.slane %v1451_v18, %v2467_v44  ;;  %v1466_v22 = vrot.slane %v1452_v19, %v2467_v44  ;;  %v1516_v34 = vshrl.u32 %v1501_v20, 16  ;;  %v1532_v41 = vshrl.u32 %v1502_v23, 16 }
 0x5cc   : > { %v1467_v28 = vcombine.high %v1459_v21, %v2290_v55  ;;  %v1468_v29 = vcombine.high %v1466_v22, %v2290_v55  ;;  %v1505_v31 = vpack.i.b16 %v1493_v14, %v1459_v21  ;;  %v1507_v33 = vshrl.u32 %v1459_v21, 16 }
 0x5cd   : > { %v1521_v37 = vpack.i.b16 %v1500_v17, %v1466_v22  ;;  %v1523_v38 = vshrl.u32 %v1466_v22, 16  ;;  %v2187_v22 = vld [vmem:[%s2759_s8] sm:$0xff]  }
 0x5ce   : > { %v1509_v39 = vpack.i.b16 %v1508_v24, %v1507_v33  ;;  %v1513_v52 = vpack.i.b16 %v1501_v20, %v1467_v28  ;;  %v1515_v40 = vshrl.u32 %v1467_v28, 16  ;;  %v1529_v6 = vpack.i.b16 %v1502_v23, %v1468_v29  ;;  %2103 = vmatpush3.bf16.msra.mxu0 %v2187_v22  ;;  %v2189_v23 = vld [vmem:[%s2761_s10] sm:$0xff]   ;;  %v2190_v24 = vld [vmem:[%s2761_s10 + $0x8] sm:$0xff]   ;;  %v2191_v28 = vld [vmem:[%s2761_s10 + $0x10] sm:$0xff]  }
 0x5cf   : > { %v1525_v42 = vpack.i.b16 %v1524_v36, %v1523_v38  ;;  %v1531_v43 = vshrl.u32 %v1468_v29, 16  ;;  %v1535_v45 = vcombine.low %v1505_v31, %v1521_v37  ;;  %2104 = vmatprep.subr.bf16.mxu0 %v2281_v8  ;;  %v2192_v29 = vld [vmem:[%s2761_s10 + $0x18] sm:$0xff]   ;;  %v2193_v31 = vld [vmem:[%s2761_s10 + $0x20] sm:$0xff]   ;;  %v2194_v33 = vld [vmem:[%s2761_s10 + $0x28] sm:$0xff]  }
 0x5d0   : > { %v1517_v46 = vpack.i.b16 %v1516_v34, %v1515_v40  ;;  %v1543_v47 = vcombine.low %v1513_v52, %v1529_v6  ;;  %v1986_v40 = vld [vmem:[%s2758_s7] ss:$0 sm:$0xff] }
 0x5d1   : > { %v1533_v51 = vpack.i.b16 %v1532_v41, %v1531_v43  ;;  %v1560_v53 = vcombine.low %v1509_v39, %v1525_v42  ;;  %v1542_v54 = vrot.slane %v1535_v45, %v2457_v35  ;;  %v1985_v39 = vld [vmem:[%s2757_s6] ss:$0 sm:$0xff]  ;;  %v2195_v43 = vld [vmem:[%s2761_s10 + $0x30] sm:$0xff]   ;;  %v2196_v45 = vld [vmem:[%s2761_s10 + $0x38] sm:$0xff]  }
 0x5d2   : > { %v1550_v56 = vrot.slane %v1543_v47, %v2457_v35 }
 0x5d3   : > { %v1568_v58 = vcombine.low %v1517_v46, %v1533_v51  ;;  %v1567_v60 = vrot.slane %v1560_v53, %v2457_v35  ;;  %v1987_v46 = vld [vmem:[%s2760_s9] ss:$0 sm:$0xff] }
 0x5d4   : > { %v1551_v59 = vcombine.low %v1542_v54, %v1550_v56 }
 0x5d5   : > { %v1575_v61 = vrot.slane %v1568_v58, %v2457_v35 }
 0x5d6   : > { %v1558_v62 = vrot.slane %v1551_v59, %v2467_v44 }
 0x5d7   : > { %v1576_v63 = vcombine.low %v1567_v60, %v1575_v61 }
 0x5d8   : > { %v1559_v2 = vcombine.high %v1558_v62, %v2290_v55  ;;  %v1588_v3 = vshrl.u32 %v1558_v62, 16 }
 0x5d9   : > { %v1583_v1 = vrot.slane %v1576_v63, %v2467_v44 }
 0x5da   : > { %v1594_v50 = vshrl.u32 %v1559_v2, 16 }
 0x5db   : > { %v1589_v30 = vshrl.u32 %v1583_v1, 16  ;;  %v1584_v4 = vcombine.high %v1583_v1, %v2290_v55  ;;  %v1587_v32 = vpack.i.b16 %v1583_v1, %v1558_v62 }
 0x5dd   : > { %v1590_v5 = vpack.i.b16 %v1589_v30, %v1588_v3  ;;  %v1593_v48 = vpack.i.b16 %v1584_v4, %v1559_v2  ;;  %v1595_v49 = vshrl.u32 %v1584_v4, 16 }
 0x5df   : > { %1597 = vrot.lane.b32.xlu1 %v1590_v5, %s2292_s19  ;;  %1599 = vrot.lane.b32.xlu0 %v1593_v48, %s2293_s20  ;;  %v1596_v35 = vpack.i.b16 %v1595_v49, %v1594_v50  ;;  %s404_s19 = scalar_lea.vmem [#allocation2], %s1966_s15 }
 0x5e0   : > { %s1903_s20 = sshll.u32 %s404_s19, 4  ;;  %s2710_s20 = int_to_ptr.vmem [resolvable:$true] %s1903_s20 }
 0x5e1   : > { %s2217_s15 = scalar_lea.vmem %s2710_s20, 128  ;;  %p2224_p0 = scmp.lt.s32.totalorder %s2710_s20, %s2222_s17 }
 0x5e2   : > { %p2218_p11 = scmp.ne.s32.totalorder %s2710_s20, %s2217_s15  ;;  %p2225_p1 = scmp.lt.s32.totalorder %s2223_s1, %s2217_s15 }
 0x5e3   : > { %1601 = vrot.lane.b32.xlu1 %v1596_v35, %s2294_s26 }
 0x5e4   : > { %p2219_p12 = pnand %p2218_p11, %p2399_p5  ;;  %p2226_p2 = por %p2225_p1, %p2224_p0 }
 0x5e6   : > { %p2220_p13 = pneg %p2219_p12 }
 0x5e8   : > { %p2227_p3 = pnand %p2226_p2, %p2220_p13 }
 0x651   : > { %v1598_v7 = vpop.permute.xlu1 %1597  ;;  %v1600_v9 = vpop.permute.xlu0 %1599 }
 0x652   : > { %v1605_v44 = vsel %vm1017_vm2, %v1587_v32, %v1598_v7 }
 0x653   : > { %v1608_v10 = vsel %vm1606_vm5, %v1605_v44, %v1600_v9 }
 0x655   : > { %v1602_v55 = vpop.permute.xlu1 %1601 }
 0x656   : > { %v1611_v26 = vsel %vm1609_vm6, %v1608_v10, %v1602_v55 }
 0x657   : > { %2099 = vmatmul.mubr.msk.bf16.vlgmr.msra.gmra.mrb[12].mxu1 %vm413_vm0, %v1611_v26 }
 0x658   : > { %2126 = vmatprep.mubr.msk.bf16.mxu1 %vm2282_vm1, %v2281_v8  ;;  %2111 = vmatpush3.bf16.msra.mxu1 %v2189_v23 }
 0x659   : > { %2112 = vmatprep.subr.bf16.mxu1 %v2281_v8 }
 0x65c   : > { %2113 = vmatpush3.bf16.msra.mxu1 %v2190_v24 }
 0x65d   : > { %2114 = vmatprep.subr.bf16.mxu1 %v2281_v8 }
 0x660   : > { %2115 = vmatpush3.bf16.msra.mxu1 %v2191_v28 }
 0x661   : > { %2116 = vmatprep.subr.bf16.mxu1 %v2281_v8 }
 0x664   : > { %2117 = vmatpush3.bf16.msra.mxu1 %v2192_v29 }
 0x665   : > { %2118 = vmatprep.subr.bf16.mxu1 %v2281_v8 }
 0x668   : > { %2119 = vmatpush3.bf16.msra.mxu1 %v2193_v31 }
 0x669   : > { %2120 = vmatprep.subr.bf16.mxu1 %v2281_v8 }
 0x66c   : > { %2121 = vmatpush3.bf16.msra.mxu1 %v2194_v33 }
 0x66d   : > { %2122 = vmatprep.subr.bf16.mxu1 %v2281_v8 }
 0x670   : > { %2123 = vmatpush3.bf16.msra.mxu1 %v2195_v43 }
 0x671   : > { %2124 = vmatprep.subr.bf16.mxu1 %v2281_v8  ;;  %v1991_v8 = vld [vmem:[%s2762_s11] ss:$0 sm:$0xff] }
 0x674   : > { %2125 = vmatpush3.bf16.msra.mxu1 %v2196_v45 }
 0x72a   : > { %v1671_v12 = vpop.f32.mrb[12].mxu1 }
 0x72b   : > { %v1672_v27 = vadd.f32 %v1981_v11, %v1671_v12  ;;  %v2100_v25 = vpop.f32.mrb[13].mxu1 }
 0x72c   : > { %v1674_v13 = vpop.f32.mrb[14].mxu1 }
 0x72d   : > { %v2645_v14 = vadd.f32 %v1672_v27, %v2414_v0  ;;  %v2101_v15 = vpop.f32.mrb[15].mxu1  ;;  %v2188_v0 = vld [vmem:[%s2759_s8 + $0x8] sm:$0xff]  }
 0x72e   : > { %2105 = vmatpush3.bf16.msra.mxu0 %v2188_v0 }
 0x72f   : > { %v1680_v16 = vsel %vm413_vm0, %v2645_v14, 0.0 }
 0x730   : > { %1681 = vadd.xlane.f32.xlu1 %v1680_v16 }
 0x7bd   : > { %v1682_v17 = vpop.xlane.xlu1 %1681 }
 0x7be   : > { %v1683_v18 = vmul.f32 0.03125, %v1682_v17 }
 0x7c0   : > { %v1684_v19 = vsub.f32 %v2645_v14, %v1683_v18 }
 0x7c2   : > { %v1685_v20 = vmul.f32 %v1684_v19, %v1684_v19 }
 0x7c4   : > { %v1686_v21 = vsel %vm413_vm0, %v1685_v20, 0.0 }
 0x7c5   : > { %1687 = vadd.xlane.f32.xlu0 %v1686_v21 }
 0x852   : > { %v1688_v34 = vpop.xlane.xlu0 %1687 }
 0x853   : > { %v1689_v36 = vmul.f32 0.03125, %v1688_v34 }
 0x855   : > { %v1690_v37 = vadd.f32 1e-05, %v1689_v36 }
 0x857   : > { %2215 = vrsqrt.f32 %v1690_v37 }
 0x861   : > { %v2216_v38 = vpop.eup %2215 }
 0x862   : > { %v1692_v52 = vmul.f32 %v2216_v38, %v1684_v19 }
 0x864   : > { %v1699_v6 = vmul.f32 %v1985_v39, %v1692_v52 }
 0x866   : > { %v1706_v41 = vadd.f32 %v1986_v40, %v1699_v6 }
 0x868   : > { %v1707_v42 = vpack.c.bf16 %v1706_v41, %v1706_v41 }
 0x86a   : > { %2107 = vmatmul.mubr.msk.bf16.vlgmr.msra.gmra.mrb[24].mxu0 %vm413_vm0, %v1707_v42 }
 0x93d   : > { %v1768_v47 = vpop.f32.mrb[24].mxu0 }
 0x93e   : > { %v1769_v51 = vadd.f32 %v1987_v46, %v1768_v47  ;;  %v2108_v53 = vpop.f32.mrb[25].mxu0 }
 0x93f   : > { %v1771_v54 = vpop.f32.mrb[26].mxu0 }
 0x940   : > { %v1774_v56 = vmax.f32 %v1769_v51, 0.0  ;;  %v2109_v57 = vpop.f32.mrb[27].mxu0 }
 0x942   : > { %v1775_v58 = vpack.c.bf16 %v1774_v56, %v1774_v56 }
 0x944   : > { %2127 = vmatmul.mubr.bf16.vlgmr.msra.gmra.mrb[16].mxu1 %v1775_v58 }
 0xa17   : > { %v1881_v59 = vpop.f32.mrb[16].mxu1 }
 0xa18   : > { %v1882_v60 = vadd.f32 %v1991_v8, %v1881_v59  ;;  %v2128_v61 = vpop.f32.mrb[17].mxu1 }
 0xa19   : > { %v1884_v62 = vpop.f32.mrb[18].mxu1 }
 0xa1a   : > { %v1887_v63 = vadd.f32 %v1882_v60, %v2645_v14  ;;  %v2129_v1 = vpop.f32.mrb[19].mxu1 }
 0xa1c   : > { %1888 = vst.msk [vmem:[%s404_s19] sm:$0xff] %vm413_vm0, %v1887_v63 }
 0xa1d   : > { %2230 = shalt.err (!%p2227_p3)
}
 0xa1e   : > { %s2231_s29 = scalar_lea.hbm %s2708_s0, 128  ;;  %s2235_s26 = scalar_lea.hbm %s2763_s12, 256 }
 0xa1f   : > { %p2232_p4 = scmp.ne.s32.totalorder %s2708_s0, %s2231_s29  ;;  %p2236_p9 = scmp.lt.u32.totalorder %s2708_s0, %s2763_s12 }
 0xa20   : > { %p2237_p10 = scmp.lt.u32.totalorder %s2235_s26, %s2231_s29  ;;  %p2239_p12 = scmp.lt.u32.totalorder %s2231_s29, %s2708_s0 }
 0xa21   : > { %p2233_p7 = pnand %p2232_p4, %p2399_p5 }
 0xa22   : > { %p2238_p11 = por %p2237_p10, %p2236_p9 }
 0xa23   : > { %p2234_p8 = pneg %p2233_p7 }
 0xa24   : > { %p2240_p13 = por %p2239_p12, %p2238_p11 }
 0xa26   : > { %p2241_p0 = pnand %p2240_p13, %p2234_p8 }
 0xa28   : > { %2244 = shalt.err (!%p2241_p0)
}
 0xa29   : > { %2130 = dma.vmem_to_hbm [thread:$0]  (%p2399_p5), %s2710_s20, 128, %s2708_s0, %s1890_s25  }
 0xa2a PF: > { %p2136_p1 = scmp.ge.s32.totalorder %s2279_s24, 2  ;;  %s1915_s1 = sand.u32 1, %s2267_s21  }
 0xa2b   : > { %s1916_s15 = scalar_lea.sflag [#allocation3], %s1915_s1 }
 0xa2c   : > { %p2133_p2 = pnand %p2136_p1, %p2403_p6 }
 0xa2e   : > { %2262 = dma.done.wait (!%p2133_p2), %s1916_s15, 128  }
 0xa2f   : > { %2264 = vsyncadd (!%p2133_p2), %s1916_s15, 4294967168  ;;  %p22_p3 = scmp.ge.s32.totalorder %s2386_s27, 4   ;;  %s2770_s21 = smov %s2271_s22 }
 0xa30   : > { %s2771_s22 = smov %s2275_s23  ;;  %s2772_s23 = smov %s2397_s30 }
 0xa31   : > { %s2773_s24 = smov %s2386_s27  ;;  %24 = sbr.rel (!%p22_p3) target bundleno = 6 (0x6), region = 103 }
 0xa38   :  { %1921 = vsyncpa [#allocation3], 1 }
 0xa39   :  { %1923 = vsyncpa [#allocation3 + $0x1], 1 }

// kernel: tpu_custom_call.1
= control target key start
LH: loop header
LB: loop body
LE: loop exit
PB: predicated region body
PF: predicated region fallthrough
CT: control target
= control target key end

     0   :  { %s2751_s0 = inlined_call_operand.vmem [shape: f32[2,8,32], index: 0, kind: input, shape index: {}]   ;;  %s2752_s1 = inlined_call_operand.vmem [shape: f32[1,32], index: 1, kind: input, shape index: {}]   ;;  %s2753_s2 = inlined_call_operand.vmem [shape: f32[1,32], index: 2, kind: input, shape index: {}]   ;;  %s2754_s3 = inlined_call_operand.vmem [shape: bf16[32,96], index: 3, kind: input, shape index: {}]   ;;  %s2755_s4 = inlined_call_operand.vmem [shape: bf16[32,32], index: 4, kind: input, shape index: {}]   ;;  %s2756_s5 = inlined_call_operand.vmem [shape: f32[1,32], index: 5, kind: input, shape index: {}]   ;;  %s2757_s6 = inlined_call_operand.vmem [shape: f32[1,32], index: 6, kind: input, shape index: {}]   ;;  %s2758_s7 = inlined_call_operand.vmem [shape: f32[1,32], index: 7, kind: input, shape index: {}]   ;;  %s2759_s8 = inlined_call_operand.vmem [shape: bf16[32,128], index: 8, kind: input, shape index: {}]   ;;  %s2760_s9 = inlined_call_operand.vmem [shape: f32[1,128], index: 9, kind: input, shape index: {}]   ;;  %s2761_s10 = inlined_call_operand.vmem [shape: bf16[128,32], index: 10, kind: input, shape index: {}]   ;;  %s2762_s11 = inlined_call_operand.vmem [shape: f32[1,32], index: 11, kind: input, shape index: {}]   ;;  %s2763_s12 = inlined_call_operand.hbm [shape: f32[2,8,32], index: 12, kind: output, shape index: {}]  }
   0x1   :  { %2764 = sst [smem:[#allocation5_spill]] %s2751_s0 }
   0x2   :  { %2765 = sst [smem:[#allocation6_spill]] %s2752_s1 }
   0x3   :  { %17 = vsyncpa [#allocation3], 0 }
   0x4   :  { %19 = vsyncpa [#allocation3 + $0x1], 0  ;;  %s2361_s21 = smov 0   ;;  %s2363_s22 = smov 0  }
   0x5   :  { %s2365_s23 = smov 0   ;;  %s2367_s24 = smov 0  }
   0x6 LB: > { %s2382_s25 = sadd.s32 4294967295, %s2279_s24   ;;  %s1962_s26 = sadd.s32 4294967294, %s2279_s24   ;;  %s2279_s24 = sphi %s2367_s24, %s2773_s24   ;;  %s2275_s23 = sphi %s2365_s23, %s2772_s23   ;;  %s2271_s22 = sphi %s2363_s22, %s2771_s22   ;;  %s2267_s21 = sphi %s2361_s21, %s2770_s21  }
   0x7   : > { %s2386_s27 = sadd.s32 1, %s2279_s24   ;;  %s289_s28 = sadd.s32 1, %s2275_s23 }
   0x8   : > { %s286_s29 = ssub.s32 %s2279_s24, %s2386_s27  ;;  %p299_p0 = scmp.ne.s32.totalorder %s2275_s23, %s2271_s22 }
   0x9   : > { %p287_p1 = scmp.eq.s32.totalorder %s286_s29, 0  ;;  %p300_p2 = scmp.eq.s32.totalorder %s2382_s25, 1 }
   0xa   : > { %p305_p3 = scmp.ne.s32.totalorder %s2271_s22, %s2267_s21  ;;  %p306_p4 = scmp.eq.s32.totalorder %s1962_s26, 1 }
   0xb   : > { %s2397_s30 = scalar_select %p287_p1, %s2275_s23, %s289_s28  }
   0xc   : > { %p2399_p5 = por %p300_p2, %p299_p0  ;;  %p2403_p6 = por %p306_p4, %p305_p3 }
   0xd   : > { %p1965_p7 = scmp.ge.s32.totalorder %s2279_s24, 1  ;;  %p364_p8 = scmp.lt.s32.totalorder %s2279_s24, 3 }
   0xf   : > { %p365_p9 = pnand %p1965_p7, %p364_p8 }
  0x10   : > { %p405_p10 = scmp.lt.s32.totalorder (!%p365_p9), %s2382_s25, 1  ;;  %vm413_vm0 = vcmask (!%p365_p9), 261120   ;;  %s2768_s0 = sld [smem:[#allocation5_spill]] (!%p365_p9)  ;;  %v2183_v7 = vld [vmem:[%s2754_s3] sm:$0xff] (!%p365_p9)   ;;  %v2281_v8 = vmov (!%p365_p9), 0.0   ;;  %vm2282_vm1 = vmmov (!%p365_p9), 0   ;;  %v513_v30 = vlaneseq (!%p365_p9) }
  0x11   : > { %368 = sbr.rel (%p365_p9) target bundleno = 2602 (0xa2a), region = 68  ;;  %2038 = vmatprep.subr.bf16.mxu0 (!%p365_p9), %v2281_v8  ;;  %2042 = vmatprep.mubr.msk.bf16.mxu0 (!%p365_p9), %vm2282_vm1, %v2281_v8  ;;  %v2184_v9 = vld [vmem:[%s2754_s3 + $0x8] sm:$0xff] (!%p365_p9)   ;;  %s2769_s1 = sld [smem:[#allocation6_spill]] (!%p365_p9)  ;;  %v1969_v16 = vld [vmem:[%s2753_s2] ss:$0 sm:$0xff] (!%p365_p9)  ;;  %v2290_v55 = vmov (!%p365_p9), 0  }
  0x12   : > { %2039 = vmatpush3.bf16.msra.mxu0 (!%p365_p9), %v2183_v7  ;;  %2058 = vmatprep.subr.bf16.mxu1 (!%p365_p9), %v2281_v8  ;;  %s2284_s20 = smov (!%p365_p9), 120   ;;  %s2285_s26 = smov (!%p365_p9), 112   ;;  %v2288_v28 = vmov (!%p365_p9), 1983009808   ;;  %v2454_v32 = vshrl.u32 (!%p365_p9), %v513_v30, 7  ;;  %vm1017_vm2 = vcmask (!%p365_p9), 64512  }
  0x13   : > { %2040 = vmatprep.subr.bf16.mxu0 (!%p365_p9), %v2281_v8  ;;  %2060 = vmatprep.mubr.msk.bf16.mxu1 (!%p365_p9), %vm2282_vm1, %v2281_v8  ;;  %s2286_s28 = smov (!%p365_p9), 96   ;;  %s2287_s29 = smov (!%p365_p9), 64   ;;  %v511_v29 = vunpack.c.l.s4 (!%p365_p9), %v2288_v28  ;;  %v2289_v33 = vmov (!%p365_p9), 1934713408   ;;  %vm1245_vm4 = vcmask (!%p365_p9), 1043456   ;;  %vm1606_vm5 = vcmask (!%p365_p9), 130048  }
  0x14   : > { %v528_v34 = vunpack.c.l.s4 (!%p365_p9), %v2289_v33  ;;  %vm1609_vm6 = vcmask (!%p365_p9), 195584   ;;  %s2001_s18 = sshll.u32 (!%p365_p9), %s2382_s25, 7 }
  0x15   : > { %v512_v31 = vunpack.c.0.s8 (!%p365_p9), %v511_v29 }
  0x16   : > { %2041 = vmatpush3.bf16.msra.mxu0 (!%p365_p9), %v2184_v9  ;;  %v529_v38 = vunpack.c.0.s8 (!%p365_p9), %v528_v34 }
  0x17   : > { %2046 = vmatprep.subr.bf16.mxu0 (!%p365_p9), %v2281_v8  ;;  %v1968_v14 = vld [vmem:[%s2769_s1] ss:$0 sm:$0xff] (!%p365_p9)  ;;  %v2457_v35 = vsub.s32 (!%p365_p9), %v512_v31, %v2454_v32 }
  0x18   : > { %s406_s15 = scalar_select %p405_p10, %s2382_s25, 1  ;;  %v2467_v44 = vsub.s32 %v529_v38, %v2454_v32 }
  0x1a   : > { %s1967_s16 = sshll.u32 %s406_s15, 3 }
  0x1b   : > { %s408_s19 = scalar_lea.vmem %s2768_s0, %s1967_s16  ;;  %s2708_s0 = scalar_lea.hbm %s2763_s12, %s2001_s18 }
  0x1c   : > { %v2414_v0 = vld [vmem:[%s408_s19] sm:$0xff]  ;;  %s2283_s19 = smov 104   ;;  %s2295_s16 = smov [#allocation2]  }
  0x1d   : > { %v414_v1 = vsel %vm413_vm0, %v2414_v0, 0.0  ;;  %s2221_s17 = sshll.u32 %s2295_s16, 4  ;;  %s2222_s17 = int_to_ptr.vmem [resolvable:$false] %s2221_s17 }
  0x1e   : > { %415 = vadd.xlane.f32.xlu0 %v414_v1  ;;  %s2223_s1 = scalar_lea.vmem %s2222_s17, 256 }
  0xab   : > { %v416_v2 = vpop.xlane.xlu0 %415 }
  0xac   : > { %v418_v3 = vmul.f32 0.03125, %v416_v2 }
  0xae   : > { %v419_v4 = vsub.f32 %v2414_v0, %v418_v3 }
  0xb0   : > { %v420_v5 = vmul.f32 %v419_v4, %v419_v4 }
  0xb2   : > { %v421_v6 = vsel %vm413_vm0, %v420_v5, 0.0 }
  0xb3   : > { %422 = vadd.xlane.f32.xlu0 %v421_v6 }
 0x140   : > { %v423_v10 = vpop.xlane.xlu0 %422 }
 0x141   : > { %v424_v11 = vmul.f32 0.03125, %v423_v10 }
 0x143   : > { %v425_v12 = vadd.f32 1e-05, %v424_v11 }
 0x145   : > { %2197 = vrsqrt.f32 %v425_v12 }
 0x14f   : > { %v2198_v13 = vpop.eup %2197 }
 0x150   : > { %v427_v15 = vmul.f32 %v2198_v13, %v419_v4 }
 0x152   : > { %v434_v17 = vmul.f32 %v1968_v14, %v427_v15 }
 0x154   : > { %v441_v18 = vadd.f32 %v1969_v16, %v434_v17 }
 0x156   : > { %v442_v19 = vpack.c.bf16 %v441_v18, %v441_v18 }
 0x158   : > { %2043 = vmatmul.mubr.msk.bf16.vlgmr.msra.gmra.mrb[0].mxu0 %vm413_vm0, %v442_v19 }
 0x159   : > { %2048 = vmatprep.mubr.msk.bf16.mxu0 %vm2282_vm1, %v2281_v8 }
 0x22b   : > { %v496_v20 = vpop.f32.mrb[0].mxu0 }
 0x22c   : > { %v502_v21 = vpack.c.bf16 %v496_v20, %v496_v20  ;;  %v2044_v22 = vpop.f32.mrb[1].mxu0 }
 0x22d   : > { %v499_v23 = vpop.f32.mrb[2].mxu0 }
 0x22e   : > { %508 = vrot.lane.b32.xlu0 %v502_v21, %s2283_s19  ;;  %504 = vrot.lane.b32.xlu1 %v502_v21, %s2284_s20  ;;  %v2045_v24 = vpop.f32.mrb[3].mxu0  ;;  %v516_v41 = vrot.slane %v502_v21, %v2457_v35  ;;  %s2292_s19 = smov 8   ;;  %s2293_s20 = smov 16  }
 0x232   : > { %506 = vrot.lane.b32.xlu1 %v502_v21, %s2285_s26  ;;  %s2294_s26 = smov 24  }
 0x236   : > { %671 = vrot.lane.b32.xlu1 %v502_v21, %s2286_s28 }
 0x2a0   : > { %v2443_v25 = vpop.permute.xlu1 %504  ;;  %v2449_v27 = vpop.permute.xlu0 %508 }
 0x2a1   : > { %673 = vrot.lane.b32.xlu1 %v2443_v25, %s2286_s28  ;;  %v558_v37 = vrot.slane %v2449_v27, %v2457_v35  ;;  %v550_v39 = vrot.slane %v2443_v25, %v2457_v35 }
 0x2a3   : > { %v559_v45 = vcombine.low %v550_v39, %v558_v37  ;;  %v560_v47 = vcombine.high %v550_v39, %v558_v37 }
 0x2a4   : > { %v2446_v26 = vpop.permute.xlu1 %506 }
 0x2a5   : > { %675 = vrot.lane.b32.xlu1 %v2446_v26, %s2286_s28  ;;  %v524_v36 = vrot.slane %v2446_v26, %v2457_v35  ;;  %v2476_v50 = vrot.slane %v559_v45, %v2467_v44  ;;  %v2479_v52 = vrot.slane %v560_v47, %v2467_v44 }
 0x2a7   : > { %v525_v42 = vcombine.low %v516_v41, %v524_v36  ;;  %v526_v43 = vcombine.high %v516_v41, %v524_v36  ;;  %v575_v60 = vcombine.high %v2476_v50, %v2290_v55  ;;  %v576_v62 = vcombine.high %v2479_v52, %v2290_v55 }
 0x2a8   : > { %v672_v40 = vpop.permute.xlu1 %671  ;;  %v582_v5 = vshrl.u32 %v2476_v50, 16  ;;  %v598_v11 = vshrl.u32 %v2479_v52, 16 }
 0x2a9   : > { %677 = vrot.lane.b32.xlu1 %v2449_v27, %s2286_s28  ;;  %v2470_v48 = vrot.slane %v525_v42, %v2467_v44  ;;  %v2473_v49 = vrot.slane %v526_v43, %v2467_v44  ;;  %v686_v53 = vrot.slane %v672_v40, %v2457_v35  ;;  %v590_v10 = vshrl.u32 %v575_v60, 16 }
 0x2aa   : > { %v606_v14 = vshrl.u32 %v576_v62, 16 }
 0x2ab   : > { %v541_v56 = vcombine.high %v2470_v48, %v2290_v55  ;;  %v542_v57 = vcombine.high %v2473_v49, %v2290_v55  ;;  %v581_v63 = vshrl.u32 %v2470_v48, 16  ;;  %v597_v3 = vshrl.u32 %v2473_v49, 16 }
 0x2ad   : > { %841 = vrot.lane.b32.xlu1 %v502_v21, %s2287_s29  ;;  %v589_v6 = vshrl.u32 %v541_v56, 16  ;;  %v605_v7 = vshrl.u32 %v542_v57, 16  ;;  %v583_v15 = vpack.i.b16 %v582_v5, %v581_v63  ;;  %v587_v16 = vpack.i.b16 %v575_v60, %v541_v56 }
 0x2ae   : > { %v599_v18 = vpack.i.b16 %v598_v11, %v597_v3  ;;  %v603_v19 = vpack.i.b16 %v576_v62, %v542_v57  ;;  %v595_v57 = vpack.i.b16 %v2479_v52, %v2473_v49 }
 0x2af   : > { %v591_v22 = vpack.i.b16 %v590_v10, %v589_v6  ;;  %v607_v23 = vpack.i.b16 %v606_v14, %v605_v7 }
 0x2b0   : > { %v617_v63 = vcombine.low %v587_v16, %v603_v19 }
 0x2b2   : > { %v624_v49 = vrot.slane %v617_v63, %v2457_v35 }
 0x313   : > { %v674_v46 = vpop.permute.xlu1 %673 }
 0x314   : > { %v720_v4 = vrot.slane %v674_v46, %v2457_v35 }
 0x317   : > { %v676_v51 = vpop.permute.xlu1 %675 }
 0x318   : > { %v694_v54 = vrot.slane %v676_v51, %v2457_v35 }
 0x31a   : > { %v695_v58 = vcombine.low %v686_v53, %v694_v54  ;;  %v696_v59 = vcombine.high %v686_v53, %v694_v54  ;;  %v579_v53 = vpack.i.b16 %v2476_v50, %v2470_v48 }
 0x31b   : > { %v678_v61 = vpop.permute.xlu1 %677 }
 0x31c   : > { %v703_v1 = vrot.slane %v695_v58, %v2467_v44  ;;  %v728_v2 = vrot.slane %v678_v61, %v2457_v35  ;;  %v710_v9 = vrot.slane %v696_v59, %v2467_v44  ;;  %v642_v58 = vcombine.low %v591_v22, %v607_v23 }
 0x31e   : > { %v729_v12 = vcombine.low %v720_v4, %v728_v2  ;;  %v730_v13 = vcombine.high %v720_v4, %v728_v2  ;;  %v711_v17 = vcombine.high %v703_v1, %v2290_v55  ;;  %v712_v24 = vcombine.high %v710_v9, %v2290_v55 }
 0x31f   : > { %v751_v28 = vshrl.u32 %v703_v1, 16  ;;  %v767_v37 = vshrl.u32 %v710_v9, 16  ;;  %v609_v4 = vcombine.low %v579_v53, %v595_v57  ;;  %v649_v5 = vrot.slane %v642_v58, %v2457_v35 }
 0x320   : > { %v737_v20 = vrot.slane %v729_v12, %v2467_v44  ;;  %v744_v21 = vrot.slane %v730_v13, %v2467_v44  ;;  %v759_v36 = vshrl.u32 %v711_v17, 16  ;;  %v775_v45 = vshrl.u32 %v712_v24, 16 }
 0x322   : > { %v745_v29 = vcombine.high %v737_v20, %v2290_v55  ;;  %v746_v31 = vcombine.high %v744_v21, %v2290_v55  ;;  %v749_v33 = vpack.i.b16 %v737_v20, %v703_v1  ;;  %v752_v34 = vshrl.u32 %v737_v20, 16 }
 0x323   : > { %v765_v38 = vpack.i.b16 %v744_v21, %v710_v9  ;;  %v768_v39 = vshrl.u32 %v744_v21, 16  ;;  %v634_v1 = vcombine.low %v583_v15, %v599_v18  ;;  %v616_v9 = vrot.slane %v609_v4, %v2457_v35 }
 0x324   : > { %v753_v40 = vpack.i.b16 %v752_v34, %v751_v28  ;;  %v757_v41 = vpack.i.b16 %v745_v29, %v711_v17  ;;  %v760_v42 = vshrl.u32 %v745_v29, 16  ;;  %v773_v43 = vpack.i.b16 %v746_v31, %v712_v24 }
 0x325   : > { %v769_v46 = vpack.i.b16 %v768_v39, %v767_v37  ;;  %v776_v47 = vshrl.u32 %v746_v31, 16  ;;  %v779_v51 = vcombine.low %v749_v33, %v765_v38  ;;  %v641_v52 = vrot.slane %v634_v1, %v2457_v35 }
 0x326   : > { %v761_v54 = vpack.i.b16 %v760_v42, %v759_v36  ;;  %v787_v56 = vcombine.low %v757_v41, %v773_v43  ;;  %v625_v12 = vcombine.low %v616_v9, %v624_v49 }
 0x327   : > { %v777_v59 = vpack.i.b16 %v776_v47, %v775_v45  ;;  %v804_v60 = vcombine.low %v753_v40, %v769_v46  ;;  %v786_v61 = vrot.slane %v779_v51, %v2457_v35  ;;  %v650_v11 = vcombine.low %v641_v52, %v649_v5 }
 0x328   : > { %v794_v62 = vrot.slane %v787_v56, %v2457_v35  ;;  %v632_v21 = vrot.slane %v625_v12, %v2467_v44  ;;  %v1014_v46 = vand.u32 127, %v513_v30  ;;  %v2291_v47 = vmov -1e+30  }
 0x329   : > { %v812_v2 = vcombine.low %v761_v54, %v777_v59  ;;  %v811_v48 = vrot.slane %v804_v60, %v2457_v35  ;;  %v657_v18 = vrot.slane %v650_v11, %v2467_v44 }
 0x32a   : > { %v795_v3 = vcombine.low %v786_v61, %v794_v62  ;;  %v633_v29 = vcombine.high %v632_v21, %v2290_v55  ;;  %v662_v38 = vshrl.u32 %v632_v21, 16  ;;  %vm1015_vm3 = vcmp.ge.s32.totalorder %v2454_v32, %v1014_v46 }
 0x32b   : > { %v819_v50 = vrot.slane %v812_v2, %v2457_v35  ;;  %v658_v24 = vcombine.high %v657_v18, %v2290_v55  ;;  %v661_v28 = vpack.i.b16 %v657_v18, %v632_v21  ;;  %v663_v37 = vshrl.u32 %v657_v18, 16 }
 0x32c   : > { %v802_v6 = vrot.slane %v795_v3, %v2467_v44  ;;  %v668_v43 = vshrl.u32 %v633_v29, 16  ;;  %v1016_v51 = vsel %vm1015_vm3, 0.0, %v2291_v47 }
 0x32d   : > { %v820_v7 = vcombine.low %v811_v48, %v819_v50  ;;  %v667_v34 = vpack.i.b16 %v658_v24, %v633_v29  ;;  %v664_v40 = vpack.i.b16 %v663_v37, %v662_v38  ;;  %v669_v42 = vshrl.u32 %v658_v24, 16 }
 0x32e   : > { %v803_v14 = vcombine.high %v802_v6, %v2290_v55  ;;  %v832_v22 = vshrl.u32 %v802_v6, 16 }
 0x32f   : > { %v827_v10 = vrot.slane %v820_v7, %v2467_v44  ;;  %v670_v45 = vpack.i.b16 %v669_v42, %v668_v43 }
 0x330   : > { %v838_v36 = vshrl.u32 %v803_v14, 16 }
 0x331   : > { %v831_v13 = vpack.i.b16 %v827_v10, %v802_v6  ;;  %v828_v15 = vcombine.high %v827_v10, %v2290_v55  ;;  %v833_v19 = vshrl.u32 %v827_v10, 16  ;;  %v842_v10 = vpop.permute.xlu1 %841 }
 0x333   : > { %v1022_v16 = vsel %vm1017_vm2, %v831_v13, 0  ;;  %v837_v17 = vpack.i.b16 %v828_v15, %v803_v14  ;;  %v834_v23 = vpack.i.b16 %v833_v19, %v832_v22  ;;  %v839_v31 = vshrl.u32 %v828_v15, 16 }
 0x334   : > { %2047 = vmatpush3.bf16.xpose.msra.mxu0 %v1022_v16  ;;  %v856_v13 = vrot.slane %v842_v10, %v2457_v35 }
 0x335   : > { %v1114_v20 = vsel %vm1017_vm2, %v837_v17, 0  ;;  %2052 = vmatprep.subr.bf16.mxu0 %v2281_v8  ;;  %v1068_v33 = vsel %vm1017_vm2, %v834_v23, 0  ;;  %v840_v39 = vpack.i.b16 %v839_v31, %v838_v36 }
 0x336   : > { %2059 = vmatpush3.bf16.xpose.msra.mxu1 %v1114_v20 }
 0x337   : > { %2070 = vmatprep.subr.bf16.mxu1 %v2281_v8  ;;  %v1160_v41 = vsel %vm1017_vm2, %v840_v39, 0 }
 0x33b   : > { %2049 = vmatmul.mubr.msk.bf16.vlgmr.msra.gmra.mrb[4].mxu0 %vm1017_vm2, %v661_v28 }
 0x33c   : > { %2053 = vmatpush3.bf16.xpose.msra.mxu0 %v1068_v33  ;;  %2054 = vmatprep.mubr.msk.bf16.mxu0 %vm2282_vm1, %v2281_v8 }
 0x33d   : > { %2061 = vmatmul.mubr.msk.bf16.vlgmr.msra.gmra.mrb[0].mxu1 %vm1017_vm2, %v667_v34  ;;  %2064 = vmatprep.subr.bf16.mxu0 %v2281_v8 }
 0x33e   : > { %2072 = vmatprep.mubr.msk.bf16.mxu1 %vm2282_vm1, %v2281_v8 }
 0x343   : > { %2055 = vmatmul.mubr.msk.bf16.vlgmr.msra.gmra.mrb[8].mxu0 %vm1017_vm2, %v664_v40 }
 0x344   : > { %2065 = vmatpush3.bf16.xpose.msra.mxu0 %v1160_v41  ;;  %2066 = vmatprep.mubr.msk.bf16.mxu0 %vm2282_vm1, %v2281_v8 }
 0x345   : > { %2076 = vmatprep.subr.bf16.mxu0 %v2281_v8 }
 0x34b   : > { %2067 = vmatmul.mubr.msk.bf16.vlgmr.msra.gmra.mrb[12].mxu0 %vm1017_vm2, %v670_v45 }
 0x34c   : > { %2078 = vmatprep.mubr.msk.bf16.mxu0 %vm2282_vm1, %v2281_v8 }
 0x40e   : > { %v1058_v53 = vpop.f32.mrb[4].mxu0 }
 0x40f   : > { %v1059_v54 = vadd.f32 %v1058_v53, %v1016_v51  ;;  %v2050_v56 = vpop.f32.mrb[5].mxu0 }
 0x410   : > { %v1061_v57 = vpop.f32.mrb[6].mxu0  ;;  %v1150_v58 = vpop.f32.mrb[0].mxu1 }
 0x411   : > { %v2051_v59 = vpop.f32.mrb[7].mxu0  ;;  %v2062_v60 = vpop.f32.mrb[1].mxu1  ;;  %v1202_v61 = vsel %vm1017_vm2, %v1059_v54, -inf  ;;  %v2557_v6 = vadd.f32 %v1150_v58, %v1016_v51 }
 0x412   : > { %v1153_v62 = vpop.f32.mrb[2].mxu1  ;;  %1203 = vmax.xlane.f32.xlu1 %v1202_v61 }
 0x413   : > { %v2063_v63 = vpop.f32.mrb[3].mxu1  ;;  %v1208_v9 = vsel %vm1017_vm2, %v2557_v6, -inf }
 0x416   : > { %v1104_v1 = vpop.f32.mrb[8].mxu0 }
 0x417   : > { %v1105_v2 = vadd.f32 %v1104_v1, %v1016_v51  ;;  %v2056_v3 = vpop.f32.mrb[9].mxu0 }
 0x418   : > { %v1107_v30 = vpop.f32.mrb[10].mxu0 }
 0x419   : > { %v2057_v4 = vpop.f32.mrb[11].mxu0  ;;  %v1205_v32 = vsel %vm1017_vm2, %v1105_v2, -inf }
 0x41a   : > { %1206 = vmax.xlane.f32.xlu0 %v1205_v32 }
 0x41e   : > { %v1196_v5 = vpop.f32.mrb[12].mxu0 }
 0x41f   : > { %v2068_v48 = vpop.f32.mrb[13].mxu0  ;;  %v2555_v52 = vadd.f32 %v1196_v5, %v1016_v51 }
 0x420   : > { %v1199_v50 = vpop.f32.mrb[14].mxu0 }
 0x421   : > { %v2069_v49 = vpop.f32.mrb[15].mxu0  ;;  %v1211_v7 = vsel %vm1017_vm2, %v2555_v52, -inf }
 0x423   : > { %845 = vrot.lane.b32.xlu1 %v2446_v26, %s2287_s29 }
 0x427   : > { %847 = vrot.lane.b32.xlu1 %v2449_v27, %s2287_s29 }
 0x430   : > { %843 = vrot.lane.b32.xlu0 %v2443_v25, %s2287_s29  ;;  %s402_s29 = sand.u32 1, %s2271_s22  }
 0x431   : > { %s1966_s15 = sshll.u32 %s402_s29, 3  ;;  %s1890_s25 = scalar_lea.sflag [#allocation3], %s402_s29 }
 0x44b   : > { %1212 = vmax.xlane.f32.xlu1 %v1211_v7 }
 0x44f   : > { %1209 = vmax.xlane.f32.xlu0 %v1208_v9 }
 0x49f   : > { %v1204_v26 = vpop.xlane.xlu1 %1203 }
 0x4a0   : > { %v1214_v11 = vsub.f32 %v1059_v54, %v1204_v26 }
 0x4a2   : > { %v1218_v12 = vmul.f32 1.442695, %v1214_v11 }
 0x4a3   : > { %v846_v27 = vpop.permute.xlu1 %845 }
 0x4a4   : > { %2199 = vpow2.f32 %v1218_v12  ;;  %v864_v25 = vrot.slane %v846_v27, %v2457_v35 }
 0x4a6   : > { %v865_v14 = vcombine.low %v856_v13, %v864_v25  ;;  %v866_v17 = vcombine.high %v856_v13, %v864_v25 }
 0x4a7   : > { %v1207_v15 = vpop.xlane.xlu0 %1206  ;;  %v848_v18 = vpop.permute.xlu1 %847 }
 0x4a8   : > { %v1215_v16 = vsub.f32 %v1105_v2, %v1207_v15  ;;  %v873_v19 = vrot.slane %v865_v14, %v2467_v44  ;;  %v898_v22 = vrot.slane %v848_v18, %v2457_v35  ;;  %v880_v24 = vrot.slane %v866_v17, %v2467_v44 }
 0x4aa   : > { %v1220_v20 = vmul.f32 1.442695, %v1215_v16  ;;  %v881_v33 = vcombine.high %v873_v19, %v2290_v55  ;;  %v882_v38 = vcombine.high %v880_v24, %v2290_v55  ;;  %v921_v39 = vshrl.u32 %v873_v19, 16 }
 0x4ab   : > { %v844_v21 = vpop.permute.xlu0 %843  ;;  %v937_v46 = vshrl.u32 %v880_v24, 16 }
 0x4ac   : > { %v890_v23 = vrot.slane %v844_v21, %v2457_v35  ;;  %2201 = vpow2.f32 %v1220_v20  ;;  %v929_v45 = vshrl.u32 %v881_v33, 16  ;;  %v945_v58 = vshrl.u32 %v882_v38, 16 }
 0x4ae   : > { %v2200_v28 = vpop.eup %2199  ;;  %v899_v29 = vcombine.low %v890_v23, %v898_v22  ;;  %v900_v31 = vcombine.high %v890_v23, %v898_v22 }
 0x4af   : > { %v1226_v34 = vsel %vm1017_vm2, %v2200_v28, 0.0 }
 0x4b0   : > { %v907_v36 = vrot.slane %v899_v29, %v2467_v44  ;;  %v914_v37 = vrot.slane %v900_v31, %v2467_v44  ;;  %1227 = vadd.xlane.f32.xlu0 %v1226_v34 }
 0x4b2   : > { %v915_v40 = vcombine.high %v907_v36, %v2290_v55  ;;  %v916_v41 = vcombine.high %v914_v37, %v2290_v55  ;;  %v919_v42 = vpack.i.b16 %v907_v36, %v873_v19  ;;  %v922_v43 = vshrl.u32 %v907_v36, 16 }
 0x4b3   : > { %v935_v47 = vpack.i.b16 %v914_v37, %v880_v24  ;;  %v938_v51 = vshrl.u32 %v914_v37, 16  ;;  %v1238_v19 = vpack.c.bf16 %v2200_v28, %v2200_v28 }
 0x4b4   : > { %v923_v53 = vpack.i.b16 %v922_v43, %v921_v39  ;;  %v927_v54 = vpack.i.b16 %v915_v40, %v881_v33  ;;  %v930_v56 = vshrl.u32 %v915_v40, 16  ;;  %v943_v57 = vpack.i.b16 %v916_v41, %v882_v38 }
 0x4b5   : > { %v939_v59 = vpack.i.b16 %v938_v51, %v937_v46  ;;  %v946_v60 = vshrl.u32 %v916_v41, 16  ;;  %v949_v61 = vcombine.low %v919_v42, %v935_v47 }
 0x4b6   : > { %v931_v62 = vpack.i.b16 %v930_v56, %v929_v45  ;;  %v957_v63 = vcombine.low %v927_v54, %v943_v57  ;;  %v2202_v1 = vpop.eup %2201 }
 0x4b7   : > { %v947_v2 = vpack.i.b16 %v946_v60, %v945_v58  ;;  %v974_v3 = vcombine.low %v923_v53, %v939_v59  ;;  %v956_v30 = vrot.slane %v949_v61, %v2457_v35  ;;  %v1229_v4 = vsel %vm1017_vm2, %v2202_v1, 0.0 }
 0x4b8   : > { %v964_v32 = vrot.slane %v957_v63, %v2457_v35  ;;  %1230 = vadd.xlane.f32.xlu0 %v1229_v4  ;;  %v1239_v22 = vpack.c.bf16 %v2202_v1, %v2202_v1 }
 0x4b9   : > { %v982_v5 = vcombine.low %v931_v62, %v947_v2  ;;  %v981_v50 = vrot.slane %v974_v3, %v2457_v35 }
 0x4ba   : > { %v965_v48 = vcombine.low %v956_v30, %v964_v32 }
 0x4bb   : > { %v989_v49 = vrot.slane %v982_v5, %v2457_v35 }
 0x4bc   : > { %v972_v7 = vrot.slane %v965_v48, %v2467_v44 }
 0x4bd   : > { %v990_v9 = vcombine.low %v981_v50, %v989_v49 }
 0x4be   : > { %v973_v10 = vcombine.high %v972_v7, %v2290_v55  ;;  %v1002_v12 = vshrl.u32 %v972_v7, 16 }
 0x4bf   : > { %v997_v26 = vrot.slane %v990_v9, %v2467_v44 }
 0x4c0   : > { %v1008_v13 = vshrl.u32 %v973_v10, 16 }
 0x4c1   : > { %v1001_v11 = vpack.i.b16 %v997_v26, %v972_v7  ;;  %v1003_v27 = vshrl.u32 %v997_v26, 16  ;;  %v998_v25 = vcombine.high %v997_v26, %v2290_v55 }
 0x4c3   : > { %v1247_v14 = vsel %vm1245_vm4, %v1001_v11, 0  ;;  %v1004_v15 = vpack.i.b16 %v1003_v27, %v1002_v12  ;;  %v1007_v16 = vpack.i.b16 %v998_v25, %v973_v10  ;;  %v1009_v17 = vshrl.u32 %v998_v25, 16 }
 0x4c4   : > { %2071 = vmatpush3.bf16.msra.mxu1 %v1247_v14 }
 0x4c5   : > { %v1293_v18 = vsel %vm1245_vm4, %v1004_v15, 0  ;;  %2082 = vmatprep.subr.bf16.mxu1 %v2281_v8  ;;  %v1010_v20 = vpack.i.b16 %v1009_v17, %v1008_v13  ;;  %v1339_v21 = vsel %vm1245_vm4, %v1007_v16, 0 }
 0x4c6   : > { %2077 = vmatpush3.bf16.msra.mxu0 %v1293_v18 }
 0x4c7   : > { %2073 = vmatmul.mubr.msk.bf16.vlgmr.msra.gmra.mrb[4].mxu1 %vm1017_vm2, %v1238_v19  ;;  %2088 = vmatprep.subr.bf16.mxu0 %v2281_v8  ;;  %v1385_v23 = vsel %vm1245_vm4, %v1010_v20, 0 }
 0x4c8   : > { %2083 = vmatpush3.bf16.msra.mxu1 %v1339_v21  ;;  %2084 = vmatprep.mubr.msk.bf16.mxu1 %vm2282_vm1, %v2281_v8 }
 0x4c9   : > { %2079 = vmatmul.mubr.msk.bf16.vlgmr.msra.gmra.mrb[16].mxu0 %vm1017_vm2, %v1239_v22  ;;  %2094 = vmatprep.subr.bf16.mxu1 %v2281_v8 }
 0x4ca   : > { %2089 = vmatpush3.bf16.msra.mxu0 %v1385_v23  ;;  %2090 = vmatprep.mubr.msk.bf16.mxu0 %vm2282_vm1, %v2281_v8 }
 0x4cb   : > { %2102 = vmatprep.subr.bf16.mxu0 %v2281_v8 }
 0x4d8   : > { %v1213_v24 = vpop.xlane.xlu1 %1212 }
 0x4d9   : > { %v1217_v28 = vsub.f32 %v2555_v52, %v1213_v24 }
 0x4db   : > { %v1224_v29 = vmul.f32 1.442695, %v1217_v28 }
 0x4dc   : > { %v1210_v31 = vpop.xlane.xlu0 %1209 }
 0x4dd   : > { %2203 = vpow2.f32 %v1224_v29  ;;  %v1216_v33 = vsub.f32 %v2557_v6, %v1210_v31  ;;  %v2185_v6 = vld [vmem:[%s2755_s4] sm:$0xff]  }
 0x4df   : > { %v1222_v34 = vmul.f32 1.442695, %v1216_v33 }
 0x4e1   : > { %2205 = vpow2.f32 %v1222_v34 }
 0x4e7   : > { %v2204_v36 = vpop.eup %2203 }
 0x4e8   : > { %v1235_v37 = vsel %vm1017_vm2, %v2204_v36, 0.0  ;;  %v1241_v38 = vpack.c.bf16 %v2204_v36, %v2204_v36 }
 0x4e9   : > { %1236 = vadd.xlane.f32.xlu0 %v1235_v37 }
 0x4ea   : > { %2091 = vmatmul.mubr.msk.bf16.vlgmr.msra.gmra.mrb[20].mxu0 %vm1017_vm2, %v1241_v38 }
 0x4eb   : > { %v2206_v39 = vpop.eup %2205  ;;  %2106 = vmatprep.mubr.msk.bf16.mxu0 %vm2282_vm1, %v2281_v8 }
 0x4ec   : > { %v1232_v52 = vsel %vm1017_vm2, %v2206_v39, 0.0  ;;  %v1240_v40 = vpack.c.bf16 %v2206_v39, %v2206_v39 }
 0x4ed   : > { %1233 = vadd.xlane.f32.xlu1 %v1232_v52 }
 0x4ee   : > { %2085 = vmatmul.mubr.msk.bf16.vlgmr.msra.gmra.mrb[8].mxu1 %vm1017_vm2, %v1240_v40 }
 0x4ef   : > { %2098 = vmatprep.mubr.msk.bf16.mxu1 %vm2282_vm1, %v2281_v8  ;;  %2095 = vmatpush3.bf16.msra.mxu1 %v2185_v6 }
 0x4f0   : > { %2096 = vmatprep.subr.bf16.mxu1 %v2281_v8 }
 0x53d   : > { %v1228_v54 = vpop.xlane.xlu0 %1227 }
 0x545   : > { %v1231_v56 = vpop.xlane.xlu0 %1230 }
 0x546   : > { %2207 = vrcp.f32 %v1231_v56 }
 0x550   : > { %v2208_v59 = vpop.eup %2207 }
 0x576   : > { %v1237_v57 = vpop.xlane.xlu0 %1236 }
 0x577   : > { %2209 = vrcp.f32 %v1237_v57  ;;  %v2186_v57 = vld [vmem:[%s2755_s4 + $0x8] sm:$0xff]  }
 0x578   : > { %2211 = vrcp.f32 %v1228_v54  ;;  %2097 = vmatpush3.bf16.msra.mxu1 %v2186_v57 }
 0x579   : > { %2110 = vmatprep.subr.bf16.mxu1 %v2281_v8 }
 0x57a   : > { %v1234_v58 = vpop.xlane.xlu1 %1233 }
 0x57b   : > { %2213 = vrcp.f32 %v1234_v58 }
 0x581   : > { %v2210_v61 = vpop.eup %2209 }
 0x582   : > { %v2212_v63 = vpop.eup %2211 }
 0x585   : > { %v2214_v48 = vpop.eup %2213 }
 0x59a   : > { %v1283_v41 = vpop.f32.mrb[4].mxu1 }
 0x59b   : > { %v2074_v42 = vpop.f32.mrb[5].mxu1  ;;  %v1431_v30 = vmul.f32 %v2212_v63, %v1283_v41 }
 0x59c   : > { %v1286_v43 = vpop.f32.mrb[6].mxu1  ;;  %v1329_v45 = vpop.f32.mrb[16].mxu0 }
 0x59d   : > { %v2075_v46 = vpop.f32.mrb[7].mxu1  ;;  %v2080_v47 = vpop.f32.mrb[17].mxu0  ;;  %v1432_v60 = vmul.f32 %v2208_v59, %v1329_v45  ;;  %v1435_v26 = vpack.c.bf16 %v1431_v30, %v1431_v30 }
 0x59e   : > { %v1332_v51 = vpop.f32.mrb[18].mxu0 }
 0x59f   : > { %v2081_v53 = vpop.f32.mrb[19].mxu0  ;;  %v1469_v1 = vpack.c.bf16 %v1432_v60, %v1432_v60  ;;  %v1442_v16 = vrot.slane %v1435_v26, %v2457_v35 }
 0x5a1   : > { %v1476_v49 = vrot.slane %v1469_v1, %v2457_v35 }
 0x5bd   : > { %v1421_v62 = vpop.f32.mrb[20].mxu0 }
 0x5be   : > { %v1434_v2 = vmul.f32 %v2210_v61, %v1421_v62  ;;  %v2092_v3 = vpop.f32.mrb[21].mxu0 }
 0x5bf   : > { %v1424_v4 = vpop.f32.mrb[22].mxu0 }
 0x5c0   : > { %v1477_v32 = vpack.c.bf16 %v1434_v2, %v1434_v2  ;;  %v2093_v5 = vpop.f32.mrb[23].mxu0 }
 0x5c1   : > { %v1375_v50 = vpop.f32.mrb[8].mxu1 }
 0x5c2   : > { %v1484_v7 = vrot.slane %v1477_v32, %v2457_v35  ;;  %v1433_v9 = vmul.f32 %v2214_v48, %v1375_v50  ;;  %v2086_v10 = vpop.f32.mrb[9].mxu1 }
 0x5c3   : > { %v1378_v11 = vpop.f32.mrb[10].mxu1 }
 0x5c4   : > { %v1485_v12 = vcombine.low %v1476_v49, %v1484_v7  ;;  %v1486_v27 = vcombine.high %v1476_v49, %v1484_v7  ;;  %v1443_v25 = vpack.c.bf16 %v1433_v9, %v1433_v9  ;;  %v2087_v13 = vpop.f32.mrb[11].mxu1  ;;  %v1981_v11 = vld [vmem:[%s2756_s5] ss:$0 sm:$0xff] }
 0x5c6   : > { %v1493_v14 = vrot.slane %v1485_v12, %v2467_v44  ;;  %v1450_v15 = vrot.slane %v1443_v25, %v2457_v35  ;;  %v1500_v17 = vrot.slane %v1486_v27, %v2467_v44 }
 0x5c8   : > { %v1451_v18 = vcombine.low %v1442_v16, %v1450_v15  ;;  %v1452_v19 = vcombine.high %v1442_v16, %v1450_v15  ;;  %v1501_v20 = vcombine.high %v1493_v14, %v2290_v55  ;;  %v1502_v23 = vcombine.high %v1500_v17, %v2290_v55 }
 0x5c9   : > { %v1508_v24 = vshrl.u32 %v1493_v14, 16  ;;  %v1524_v36 = vshrl.u32 %v1500_v17, 16 }
 0x5ca   : > { %v1459_v21 = vrot.slane %v1451_v18, %v2467_v44  ;;  %v1466_v22 = vrot.slane %v1452_v19, %v2467_v44  ;;  %v1516_v34 = vshrl.u32 %v1501_v20, 16  ;;  %v1532_v41 = vshrl.u32 %v1502_v23, 16 }
 0x5cc   : > { %v1467_v28 = vcombine.high %v1459_v21, %v2290_v55  ;;  %v1468_v29 = vcombine.high %v1466_v22, %v2290_v55  ;;  %v1505_v31 = vpack.i.b16 %v1493_v14, %v1459_v21  ;;  %v1507_v33 = vshrl.u32 %v1459_v21, 16 }
 0x5cd   : > { %v1521_v37 = vpack.i.b16 %v1500_v17, %v1466_v22  ;;  %v1523_v38 = vshrl.u32 %v1466_v22, 16  ;;  %v2187_v22 = vld [vmem:[%s2759_s8] sm:$0xff]  }
 0x5ce   : > { %v1509_v39 = vpack.i.b16 %v1508_v24, %v1507_v33  ;;  %v1513_v52 = vpack.i.b16 %v1501_v20, %v1467_v28  ;;  %v1515_v40 = vshrl.u32 %v1467_v28, 16  ;;  %v1529_v6 = vpack.i.b16 %v1502_v23, %v1468_v29  ;;  %2103 = vmatpush3.bf16.msra.mxu0 %v2187_v22  ;;  %v2189_v23 = vld [vmem:[%s2761_s10] sm:$0xff]   ;;  %v2190_v24 = vld [vmem:[%s2761_s10 + $0x8] sm:$0xff]   ;;  %v2191_v28 = vld [vmem:[%s2761_s10 + $0x10] sm:$0xff]  }
 0x5cf   : > { %v1525_v42 = vpack.i.b16 %v1524_v36, %v1523_v38  ;;  %v1531_v43 = vshrl.u32 %v1468_v29, 16  ;;  %v1535_v45 = vcombine.low %v1505_v31, %v1521_v37  ;;  %2104 = vmatprep.subr.bf16.mxu0 %v2281_v8  ;;  %v2192_v29 = vld [vmem:[%s2761_s10 + $0x18] sm:$0xff]   ;;  %v2193_v31 = vld [vmem:[%s2761_s10 + $0x20] sm:$0xff]   ;;  %v2194_v33 = vld [vmem:[%s2761_s10 + $0x28] sm:$0xff]  }
 0x5d0   : > { %v1517_v46 = vpack.i.b16 %v1516_v34, %v1515_v40  ;;  %v1543_v47 = vcombine.low %v1513_v52, %v1529_v6  ;;  %v1986_v40 = vld [vmem:[%s2758_s7] ss:$0 sm:$0xff] }
 0x5d1   : > { %v1533_v51 = vpack.i.b16 %v1532_v41, %v1531_v43  ;;  %v1560_v53 = vcombine.low %v1509_v39, %v1525_v42  ;;  %v1542_v54 = vrot.slane %v1535_v45, %v2457_v35  ;;  %v1985_v39 = vld [vmem:[%s2757_s6] ss:$0 sm:$0xff]  ;;  %v2195_v43 = vld [vmem:[%s2761_s10 + $0x30] sm:$0xff]   ;;  %v2196_v45 = vld [vmem:[%s2761_s10 + $0x38] sm:$0xff]  }
 0x5d2   : > { %v1550_v56 = vrot.slane %v1543_v47, %v2457_v35 }
 0x5d3   : > { %v1568_v58 = vcombine.low %v1517_v46, %v1533_v51  ;;  %v1567_v60 = vrot.slane %v1560_v53, %v2457_v35  ;;  %v1987_v46 = vld [vmem:[%s2760_s9] ss:$0 sm:$0xff] }
 0x5d4   : > { %v1551_v59 = vcombine.low %v1542_v54, %v1550_v56 }
 0x5d5   : > { %v1575_v61 = vrot.slane %v1568_v58, %v2457_v35 }
 0x5d6   : > { %v1558_v62 = vrot.slane %v1551_v59, %v2467_v44 }
 0x5d7   : > { %v1576_v63 = vcombine.low %v1567_v60, %v1575_v61 }
 0x5d8   : > { %v1559_v2 = vcombine.high %v1558_v62, %v2290_v55  ;;  %v1588_v3 = vshrl.u32 %v1558_v62, 16 }
 0x5d9   : > { %v1583_v1 = vrot.slane %v1576_v63, %v2467_v44 }
 0x5da   : > { %v1594_v50 = vshrl.u32 %v1559_v2, 16 }
 0x5db   : > { %v1589_v30 = vshrl.u32 %v1583_v1, 16  ;;  %v1584_v4 = vcombine.high %v1583_v1, %v2290_v55  ;;  %v1587_v32 = vpack.i.b16 %v1583_v1, %v1558_v62 }
 0x5dd   : > { %v1590_v5 = vpack.i.b16 %v1589_v30, %v1588_v3  ;;  %v1593_v48 = vpack.i.b16 %v1584_v4, %v1559_v2  ;;  %v1595_v49 = vshrl.u32 %v1584_v4, 16 }
 0x5df   : > { %1597 = vrot.lane.b32.xlu1 %v1590_v5, %s2292_s19  ;;  %1599 = vrot.lane.b32.xlu0 %v1593_v48, %s2293_s20  ;;  %v1596_v35 = vpack.i.b16 %v1595_v49, %v1594_v50  ;;  %s404_s19 = scalar_lea.vmem [#allocation2], %s1966_s15 }
 0x5e0   : > { %s1903_s20 = sshll.u32 %s404_s19, 4  ;;  %s2710_s20 = int_to_ptr.vmem [resolvable:$true] %s1903_s20 }
 0x5e1   : > { %s2217_s15 = scalar_lea.vmem %s2710_s20, 128  ;;  %p2224_p0 = scmp.lt.s32.totalorder %s2710_s20, %s2222_s17 }
 0x5e2   : > { %p2218_p11 = scmp.ne.s32.totalorder %s2710_s20, %s2217_s15  ;;  %p2225_p1 = scmp.lt.s32.totalorder %s2223_s1, %s2217_s15 }
 0x5e3   : > { %1601 = vrot.lane.b32.xlu1 %v1596_v35, %s2294_s26 }
 0x5e4   : > { %p2219_p12 = pnand %p2218_p11, %p2399_p5  ;;  %p2226_p2 = por %p2225_p1, %p2224_p0 }
 0x5e6   : > { %p2220_p13 = pneg %p2219_p12 }
 0x5e8   : > { %p2227_p3 = pnand %p2226_p2, %p2220_p13 }
 0x651   : > { %v1598_v7 = vpop.permute.xlu1 %1597  ;;  %v1600_v9 = vpop.permute.xlu0 %1599 }
 0x652   : > { %v1605_v44 = vsel %vm1017_vm2, %v1587_v32, %v1598_v7 }
 0x653   : > { %v1608_v10 = vsel %vm1606_vm5, %v1605_v44, %v1600_v9 }
 0x655   : > { %v1602_v55 = vpop.permute.xlu1 %1601 }
 0x656   : > { %v1611_v26 = vsel %vm1609_vm6, %v1608_v10, %v1602_v55 }
 0x657   : > { %2099 = vmatmul.mubr.msk.bf16.vlgmr.msra.gmra.mrb[12].mxu1 %vm413_vm0, %v1611_v26 }
 0x658   : > { %2126 = vmatprep.mubr.msk.bf16.mxu1 %vm2282_vm1, %v2281_v8  ;;  %2111 = vmatpush3.bf16.msra.mxu1 %v2189_v23 }
 0x659   : > { %2112 = vmatprep.subr.bf16.mxu1 %v2281_v8 }
 0x65c   : > { %2113 = vmatpush3.bf16.msra.mxu1 %v2190_v24 }
 0x65d   : > { %2114 = vmatprep.subr.bf16.mxu1 %v2281_v8 }
 0x660   : > { %2115 = vmatpush3.bf16.msra.mxu1 %v2191_v28 }
 0x661   : > { %2116 = vmatprep.subr.bf16.mxu1 %v2281_v8 }
 0x664   : > { %2117 = vmatpush3.bf16.msra.mxu1 %v2192_v29 }
 0x665   : > { %2118 = vmatprep.subr.bf16.mxu1 %v2281_v8 }
 0x668   : > { %2119 = vmatpush3.bf16.msra.mxu1 %v2193_v31 }
 0x669   : > { %2120 = vmatprep.subr.bf16.mxu1 %v2281_v8 }
 0x66c   : > { %2121 = vmatpush3.bf16.msra.mxu1 %v2194_v33 }
 0x66d   : > { %2122 = vmatprep.subr.bf16.mxu1 %v2281_v8 }
 0x670   : > { %2123 = vmatpush3.bf16.msra.mxu1 %v2195_v43 }
 0x671   : > { %2124 = vmatprep.subr.bf16.mxu1 %v2281_v8  ;;  %v1991_v8 = vld [vmem:[%s2762_s11] ss:$0 sm:$0xff] }
 0x674   : > { %2125 = vmatpush3.bf16.msra.mxu1 %v2196_v45 }
 0x72a   : > { %v1671_v12 = vpop.f32.mrb[12].mxu1 }
 0x72b   : > { %v1672_v27 = vadd.f32 %v1981_v11, %v1671_v12  ;;  %v2100_v25 = vpop.f32.mrb[13].mxu1 }
 0x72c   : > { %v1674_v13 = vpop.f32.mrb[14].mxu1 }
 0x72d   : > { %v2645_v14 = vadd.f32 %v1672_v27, %v2414_v0  ;;  %v2101_v15 = vpop.f32.mrb[15].mxu1  ;;  %v2188_v0 = vld [vmem:[%s2759_s8 + $0x8] sm:$0xff]  }
 0x72e   : > { %2105 = vmatpush3.bf16.msra.mxu0 %v2188_v0 }
 0x72f   : > { %v1680_v16 = vsel %vm413_vm0, %v2645_v14, 0.0 }
 0x730   : > { %1681 = vadd.xlane.f32.xlu1 %v1680_v16 }
 0x7bd   : > { %v1682_v17 = vpop.xlane.xlu1 %1681 }
 0x7be   : > { %v1683_v18 = vmul.f32 0.03125, %v1682_v17 }
 0x7c0   : > { %v1684_v19 = vsub.f32 %v2645_v14, %v1683_v18 }
 0x7c2   : > { %v1685_v20 = vmul.f32 %v1684_v19, %v1684_v19 }
 0x7c4   : > { %v1686_v21 = vsel %vm413_vm0, %v1685_v20, 0.0 }
 0x7c5   : > { %1687 = vadd.xlane.f32.xlu0 %v1686_v21 }
 0x852   : > { %v1688_v34 = vpop.xlane.xlu0 %1687 }
 0x853   : > { %v1689_v36 = vmul.f32 0.03125, %v1688_v34 }
 0x855   : > { %v1690_v37 = vadd.f32 1e-05, %v1689_v36 }
 0x857   : > { %2215 = vrsqrt.f32 %v1690_v37 }
 0x861   : > { %v2216_v38 = vpop.eup %2215 }
 0x862   : > { %v1692_v52 = vmul.f32 %v2216_v38, %v1684_v19 }
 0x864   : > { %v1699_v6 = vmul.f32 %v1985_v39, %v1692_v52 }
 0x866   : > { %v1706_v41 = vadd.f32 %v1986_v40, %v1699_v6 }
 0x868   : > { %v1707_v42 = vpack.c.bf16 %v1706_v41, %v1706_v41 }
 0x86a   : > { %2107 = vmatmul.mubr.msk.bf16.vlgmr.msra.gmra.mrb[24].mxu0 %vm413_vm0, %v1707_v42 }
 0x93d   : > { %v1768_v47 = vpop.f32.mrb[24].mxu0 }
 0x93e   : > { %v1769_v51 = vadd.f32 %v1987_v46, %v1768_v47  ;;  %v2108_v53 = vpop.f32.mrb[25].mxu0 }
 0x93f   : > { %v1771_v54 = vpop.f32.mrb[26].mxu0 }
 0x940   : > { %v1774_v56 = vmax.f32 %v1769_v51, 0.0  ;;  %v2109_v57 = vpop.f32.mrb[27].mxu0 }
 0x942   : > { %v1775_v58 = vpack.c.bf16 %v1774_v56, %v1774_v56 }
 0x944   : > { %2127 = vmatmul.mubr.bf16.vlgmr.msra.gmra.mrb[16].mxu1 %v1775_v58 }
 0xa17   : > { %v1881_v59 = vpop.f32.mrb[16].mxu1 }
 0xa18   : > { %v1882_v60 = vadd.f32 %v1991_v8, %v1881_v59  ;;  %v2128_v61 = vpop.f32.mrb[17].mxu1 }
 0xa19   : > { %v1884_v62 = vpop.f32.mrb[18].mxu1 }
 0xa1a   : > { %v1887_v63 = vadd.f32 %v1882_v60, %v2645_v14  ;;  %v2129_v1 = vpop.f32.mrb[19].mxu1 }
 0xa1c   : > { %1888 = vst.msk [vmem:[%s404_s19] sm:$0xff] %vm413_vm0, %v1887_v63 }
 0xa1d   : > { %2230 = shalt.err (!%p2227_p3)
}
 0xa1e   : > { %s2231_s29 = scalar_lea.hbm %s2708_s0, 128  ;;  %s2235_s26 = scalar_lea.hbm %s2763_s12, 256 }
 0xa1f   : > { %p2232_p4 = scmp.ne.s32.totalorder %s2708_s0, %s2231_s29  ;;  %p2236_p9 = scmp.lt.u32.totalorder %s2708_s0, %s2763_s12 }
 0xa20   : > { %p2237_p10 = scmp.lt.u32.totalorder %s2235_s26, %s2231_s29  ;;  %p2239_p12 = scmp.lt.u32.totalorder %s2231_s29, %s2708_s0 }
 0xa21   : > { %p2233_p7 = pnand %p2232_p4, %p2399_p5 }
 0xa22   : > { %p2238_p11 = por %p2237_p10, %p2236_p9 }
 0xa23   : > { %p2234_p8 = pneg %p2233_p7 }
 0xa24   : > { %p2240_p13 = por %p2239_p12, %p2238_p11 }
 0xa26   : > { %p2241_p0 = pnand %p2240_p13, %p2234_p8 }
 0xa28   : > { %2244 = shalt.err (!%p2241_p0)
}
 0xa29   : > { %2130 = dma.vmem_to_hbm [thread:$0]  (%p2399_p5), %s2710_s20, 128, %s2708_s0, %s1890_s25  }
 0xa2a PF: > { %p2136_p1 = scmp.ge.s32.totalorder %s2279_s24, 2  ;;  %s1915_s1 = sand.u32 1, %s2267_s21  }
 0xa2b   : > { %s1916_s15 = scalar_lea.sflag [#allocation3], %s1915_s1 }
 0xa2c   : > { %p2133_p2 = pnand %p2136_p1, %p2403_p6 }
 0xa2e   : > { %2262 = dma.done.wait (!%p2133_p2), %s1916_s15, 128  }
 0xa2f   : > { %2264 = vsyncadd (!%p2133_p2), %s1916_s15, 4294967168  ;;  %p22_p3 = scmp.ge.s32.totalorder %s2386_s27, 4   ;;  %s2770_s21 = smov %s2271_s22 }
 0xa30   : > { %s2771_s22 = smov %s2275_s23  ;;  %s2772_s23 = smov %s2397_s30 }
 0xa31   : > { %s2773_s24 = smov %s2386_s27  ;;  %24 = sbr.rel (!%p22_p3) target bundleno = 6 (0x6), region = 103 }
 0xa38   :  { %1921 = vsyncpa [#allocation3], 1 }
 0xa39   :  { %1923 = vsyncpa [#allocation3 + $0x1], 1 }

</bundles_post_ra>
